<compile_context>
chip_gen: v7x
topology: tpu7x:2x2x1
jax: 0.10.0
libtpu: 0.0.40
codegen_flags: <defaults>
</compile_context>

<pallas_src>
import functools

import jax
import jax.numpy as jnp
from jax import lax
from jax.experimental import pallas as pl
from jax.experimental.pallas import tpu as pltpu

# ---------------- configuration (small, consistent with the module) ----------
B = 2
INPLANES = 32            # must be divisible by scales; == outplanes (residual add)
OUTPLANES = 32
H = W = 16
T = 1
SCALES = 4
DILAT = (1, 2, 3, 4)
BOTTLENECK = INPLANES * T
CHUNK = BOTTLENECK // SCALES
EPS = 1e-5


# ---------------- Pallas kernel ----------------------------------------------
def cfpn_kernel(x_ref, w1_ref, w3_ref, p_ref, o_ref, *, dilat, scales, H, W):
    n_blk, _, n_img = x_ref.shape            # images per grid step, H*W per image
    cb = w1_ref.shape[0]                     # bottleneck planes
    cout = w3_ref.shape[1]
    chunk = cb // scales

    w1 = w1_ref[...]                         # (Cb, Cin), BN1-folded
    pv = p_ref[...]                          # (Cb, 16): taps[0:9] | bn2 b[9] | b1[10] | b3[11]
    b1 = pv[:, 10:11]                        # (Cb, 1)
    b3 = pv[:cout, 11:12]                    # (Cout, 1)  (Cout == Cb in this config)

    # Per-lane spatial coordinates (image-relative), hoisted out of all loops.
    lane = lax.broadcasted_iota(jnp.int32, (chunk, n_img), 1)   # flattened h*W + w
    if (W & (W - 1)) == 0:
        col = lane & (W - 1)                 # column index within its row
    else:
        col = lax.rem(lane, W)

    offsets = [(oi, oj) for oi in (-1, 0, 1) for oj in (-1, 0, 1)]

    for b in range(n_blk):                   # static unroll over images in this block
        x = x_ref[b]                         # (Cin, N) f32, reused for the residual add

        # conv1 (1x1) + folded BN1 + ReLU : lane-dense MXU matmul.
        h1 = jnp.maximum(
            jnp.dot(w1, x, preferred_element_type=jnp.float32) + b1, 0.0)   # (Cb, N)

        # conv3 accumulator; residual identity and folded BN3 bias folded into init.
        acc = x + b3                                                        # (Cout, N)

        prev = None
        for s in range(scales):
            d = dilat[s]
            xs = h1[s * chunk:(s + 1) * chunk, :]        # aligned 8-sublane slice
            if s > 0:
                xs = xs + prev                           # cascade: xs[s] + ys[s-1]
            ws = pv[s * chunk:(s + 1) * chunk, :]        # (chunk, 16) register slice

            # Edge-validity masks for this dilation: h-check is a range check on
            # the flattened index (offset is a multiple of W); w-check on the column.
            hmask = {-1: lane >= d * W, 0: None, 1: lane < n_img - d * W}
            wmask = {-1: col >= d,      0: None, 1: col < W - d}

            dw = xs * ws[:, 4:5]                         # center tap: no shift, no mask
            for k, (oi, oj) in enumerate(offsets):
                if oi == 0 and oj == 0:
                    continue
                # roll so that lane n sees x[n + (oi*W + oj)*d]; wrapped lanes are
                # exactly the spatially-invalid ones and get masked to zero.
                shift = (-(oi * W + oj) * d) % n_img
                tap = pltpu.roll(xs, shift, axis=1) * ws[:, k:k + 1]
                hm, wm = hmask[oi], wmask[oj]
                mask = hm if wm is None else (wm if hm is None else jnp.logical_and(hm, wm))
                dw = dw + jnp.where(mask, tap, 0.0)

            y = jnp.maximum(dw + ws[:, 9:10], 0.0)       # folded BN2 bias + ReLU
            prev = y
            # conv3 partial accumulation: hide the K=chunk matmul under the
            # remaining cascade instead of one serialized final dot.
            acc = acc + jnp.dot(w3_ref[s], y, preferred_element_type=jnp.float32)

        # Final ReLU; store is an unmasked, lane-aligned (Cout, N) slab.
        o_ref[b] = jnp.maximum(acc, 0.0).astype(o_ref.dtype)


# ---------------- wrapper -----------------------------------------------------
def _imgs_per_step(batch):
    # v7x (2 TCs) / v4 / v5p (megacore): shard images across cores via a parallel
    # grid (1 image per step).  Single-core v5e / v6e: whole batch in one step,
    # avoiding ~0.35us/step of extra grid overhead.  Any divisor of B is correct.
    try:
        kind = jax.devices()[0].device_kind.lower()
    except Exception:
        return 1
    single_core = any(t in kind for t in ("v5 lite", "v5e", "v6 lite", "v6e"))
    return batch if single_core else 1


def contextual_fpn_pallas(x_nchw, fused):
    b, c, h, w = x_nchw.shape
    n = h * w
    x_flat = x_nchw.reshape(b, c, n)                   # free: merges trailing dims
    w1, w3s, params = fused["w1"], fused["w3s"], fused["params"]
    cb = w1.shape[0]
    cout = w3s.shape[1]

    blk_b = _imgs_per_step(b)
    assert b % blk_b == 0
    grid = (b // blk_b,)

    kernel = functools.partial(cfpn_kernel, dilat=DILAT, scales=SCALES, H=h, W=w)

    flops = int(b * (2 * cb * c * n + 2 * cout * cb * n + SCALES * CHUNK * n * (9 * 2 + 4)))
    bytes_accessed = int(4 * (x_flat.size + b * cout * n + w1.size + w3s.size + params.size))

    out = pl.pallas_call(
        kernel,
        out_shape=jax.ShapeDtypeStruct((b, cout, n), jnp.float32),
        grid=grid,
        in_specs=[
            pl.BlockSpec((blk_b, c, n), lambda i: (i, 0, 0)),
            pl.BlockSpec(w1.shape, lambda i: (0, 0)),        # resident across steps
            pl.BlockSpec(w3s.shape, lambda i: (0, 0, 0)),
            pl.BlockSpec(params.shape, lambda i: (0, 0)),
        ],
        out_specs=pl.BlockSpec((blk_b, cout, n), lambda i: (i, 0, 0)),
        compiler_params=pltpu.CompilerParams(dimension_semantics=("parallel",)),
        cost_estimate=pl.CostEstimate(flops=flops, transcendentals=0,
                                      bytes_accessed=bytes_accessed),
    )(x_flat, w1, w3s, params)
    return out.reshape(b, cout, h, w)                  # free


# ---------------- deterministic parameter init + BN folding -------------------
def init_params(key):
    ks = jax.random.split(key, 12)

    def bn_params(k, c):
        k1, k2, k3, k4 = jax.random.split(k, 4)
        gamma = jax.random.uniform(k1, (c,), minval=0.5, maxval=1.5)
        beta = 0.1 * jax.random.normal(k2, (c,))
        mean = 0.1 * jax.random.normal(k3, (c,))
        var = jax.random.uniform(k4, (c,), minval=0.5, maxval=1.5)
        return gamma, beta, mean, var

    w1_oihw = 0.2 * jax.random.normal(ks[0], (BOTTLENECK, INPLANES, 1, 1))
    bn1 = bn_params(ks[1], BOTTLENECK)
    wdw = 0.2 * jax.random.normal(ks[2], (SCALES, CHUNK, 1, 3, 3))   # depthwise 3x3
    bn2 = [bn_params(ks[3 + s], CHUNK) for s in range(SCALES)]
    w3_oihw = 0.2 * jax.random.normal(ks[8], (OUTPLANES, BOTTLENECK, 1, 1))
    bn3 = bn_params(ks[9], OUTPLANES)

    raw = dict(w1=w1_oihw, bn1=bn1, wdw=wdw, bn2=bn2, w3=w3_oihw, bn3=bn3)

    def fold(bn):
        gamma, beta, mean, var = bn
        scale = gamma / jnp.sqrt(var + EPS)
        return scale, beta - mean * scale

    s1, bias1 = fold(bn1)
    s3, bias3 = fold(bn3)
    s2 = jnp.stack([fold(bn2[s])[0] for s in range(SCALES)])          # (scales, chunk)
    bias2 = jnp.stack([fold(bn2[s])[1] for s in range(SCALES)])

    # (out, in) layouts for channels-on-sublane matmuls.
    w1_f = (w1_oihw[:, :, 0, 0] * s1[:, None]).astype(jnp.float32)    # (Cb, Cin)
    w3_f = (w3_oihw[:, :, 0, 0] * s3[:, None]).astype(jnp.float32)    # (Cout, Cb)
    # Pre-split w3 by scale so per-scale partial matmuls index the leading dim.
    w3s = jnp.stack([w3_f[:, s * CHUNK:(s + 1) * CHUNK] for s in range(SCALES)],
                    axis=0)                                           # (scales, Cout, chunk)

    # Lane-dense per-channel params: row = bottleneck channel (s*chunk + c),
    # cols 0..8 = BN2-folded depthwise taps (3*ki+kj), 9 = bn2 bias,
    # 10 = folded BN1 bias, 11 = folded BN3 bias (relies on Cout == Cb),
    # 12..15 = padding.
    dw_scaled = wdw[:, :, 0, :, :] * s2[:, :, None, None]             # (scales, chunk, 3, 3)
    taps = dw_scaled.reshape(SCALES * CHUNK, 9)
    params = jnp.zeros((BOTTLENECK, 16), jnp.float32)
    params = params.at[:, 0:9].set(taps)
    params = params.at[:, 9].set(bias2.reshape(-1))
    params = params.at[:, 10].set(bias1)
    params = params.at[:, 11].set(bias3)
    params = params.astype(jnp.float32)

    fused = dict(w1=w1_f, w3s=w3s.astype(jnp.float32), params=params)
    return raw, fused


# ---------------- pure-JAX reference (for correctness check) ------------------
def reference_forward(x, raw):
    def bn(y, p):
        gamma, beta, mean, var = p
        inv = gamma / jnp.sqrt(var + EPS)
        return (y - mean[None, :, None, None]) * inv[None, :, None, None] \
            + beta[None, :, None, None]

    dn = ("NCHW", "OIHW", "NCHW")
    out = lax.conv_general_dilated(x, raw["w1"], (1, 1), "VALID", dimension_numbers=dn)
    out = jax.nn.relu(bn(out, raw["bn1"]))
    xs = jnp.split(out, SCALES, axis=1)
    ys = []
    for s in range(SCALES):
        inp = xs[s] if s == 0 else xs[s] + ys[-1]
        d = DILAT[s]
        c = lax.conv_general_dilated(inp, raw["wdw"][s], (1, 1),
                                     [(d, d), (d, d)], rhs_dilation=(d, d),
                                     dimension_numbers=dn, feature_group_count=CHUNK)
        ys.append(jax.nn.relu(bn(c, raw["bn2"][s])))
    out = jnp.concatenate(ys, axis=1)
    out = lax.conv_general_dilated(out, raw["w3"], (1, 1), "VALID", dimension_numbers=dn)
    out = bn(out, raw["bn3"])
    return jax.nn.relu(out + x)


if __name__ == "__main__":
    key = jax.random.PRNGKey(0)
    kx, kp = jax.random.split(key)
    x = jax.random.normal(kx, (B, INPLANES, H, W), dtype=jnp.float32)
    raw, fused = init_params(kp)

    out = jax.block_until_ready(contextual_fpn_pallas(x, fused))
    assert out.shape == (B, OUTPLANES, H, W), out.shape

    ref = jax.block_until_ready(reference_forward(x, raw))
    err = float(jnp.max(jnp.abs(out - ref)))
    assert err < 1e-3, f"max abs err {err}"

    print("KERNEL_OK")
</pallas_src>

<mosaic_0001>
module attributes {stable_mosaic.version = 11 : i64} {
  func.func @cfpn_kernel(%arg0: i32, %arg1: memref<1x32x256xf32, #tpu.memory_space<vmem>>, %arg2: memref<32x32xf32, #tpu.memory_space<vmem>>, %arg3: memref<4x32x8xf32, #tpu.memory_space<vmem>>, %arg4: memref<32x16xf32, #tpu.memory_space<vmem>>, %arg5: memref<1x32x256xf32, #tpu.memory_space<vmem>>) attributes {dimension_semantics = [#tpu.dimension_semantics<parallel>], iteration_bounds = array<i64: 2>, scalar_prefetch = 0 : i64, scratch_operands = 0 : i64, tpu.core_type = #tpu.core_type<tc>, window_params = [{transform_indices = @transform_0, window_bounds = array<i64: 1, 32, 256>}, {pipeline_mode = #tpu.pipeline_mode<synchronous>, transform_indices = @transform_1, window_bounds = array<i64: 32, 32>}, {pipeline_mode = #tpu.pipeline_mode<synchronous>, transform_indices = @transform_2, window_bounds = array<i64: 4, 32, 8>}, {pipeline_mode = #tpu.pipeline_mode<synchronous>, transform_indices = @transform_3, window_bounds = array<i64: 32, 16>}, {transform_indices = @transform_4, window_bounds = array<i64: 1, 32, 256>}]} {
    %c0 = arith.constant 0 : index
    %c0_0 = arith.constant 0 : index
    %0 = vector.load %arg2[%c0, %c0_0] : memref<32x32xf32, #tpu.memory_space<vmem>>, vector<32x32xf32>
    %c0_1 = arith.constant 0 : index
    %c0_2 = arith.constant 0 : index
    %1 = vector.load %arg4[%c0_1, %c0_2] : memref<32x16xf32, #tpu.memory_space<vmem>>, vector<32x16xf32>
    %2 = vector.extract_strided_slice %1 {offsets = [0, 10], sizes = [32, 1], strides = [1, 1]} : vector<32x16xf32> to vector<32x1xf32>
    %3 = vector.extract_strided_slice %1 {offsets = [0, 11], sizes = [32, 1], strides = [1, 1]} : vector<32x16xf32> to vector<32x1xf32>
    %4 = tpu.iota {dimensions = array<i32: 1>} : vector<8x256xi32>
    %c15_i32 = arith.constant 15 : i32
    %5 = vector.broadcast %c15_i32 : i32 to vector<8x256xi32>
    %6 = arith.andi %4, %5 : vector<8x256xi32>
    %c0_3 = arith.constant 0 : index
    %c0_4 = arith.constant 0 : index
    %c0_5 = arith.constant 0 : index
    %7 = vector.load %arg1[%c0_3, %c0_4, %c0_5] : memref<1x32x256xf32, #tpu.memory_space<vmem>>, vector<1x32x256xf32>
    %8 = vector.shape_cast %7 : vector<1x32x256xf32> to vector<32x256xf32>
    %cst = arith.constant dense<0.000000e+00> : vector<32x256xf32>
    %9 = tpu.matmul %0, %8, %cst {dimension_numbers = #tpu.dot_dimension_numbers<[1], [0], [0], [1], [0, 0, 1, 1], [], []>} : vector<32x32xf32>, vector<32x256xf32>, vector<32x256xf32> -> vector<32x256xf32>
    %10 = vector.broadcast %2 : vector<32x1xf32> to vector<32x256xf32>
    %11 = arith.addf %9, %10 : vector<32x256xf32>
    %cst_6 = arith.constant 0.000000e+00 : f32
    %12 = vector.broadcast %cst_6 : f32 to vector<32x256xf32>
    %13 = arith.maximumf %11, %12 : vector<32x256xf32>
    %14 = vector.broadcast %3 : vector<32x1xf32> to vector<32x256xf32>
    %15 = arith.addf %8, %14 : vector<32x256xf32>
    %16 = vector.extract_strided_slice %13 {offsets = [0, 0], sizes = [8, 256], strides = [1, 1]} : vector<32x256xf32> to vector<8x256xf32>
    %17 = vector.extract_strided_slice %1 {offsets = [0, 0], sizes = [8, 16], strides = [1, 1]} : vector<32x16xf32> to vector<8x16xf32>
    %c16_i32 = arith.constant 16 : i32
    %18 = vector.broadcast %c16_i32 : i32 to vector<8x256xi32>
    %19 = arith.cmpi sge, %4, %18 : vector<8x256xi32>
    %c240_i32 = arith.constant 240 : i32
    %20 = vector.broadcast %c240_i32 : i32 to vector<8x256xi32>
    %21 = arith.cmpi slt, %4, %20 : vector<8x256xi32>
    %c1_i32 = arith.constant 1 : i32
    %22 = vector.broadcast %c1_i32 : i32 to vector<8x256xi32>
    %23 = arith.cmpi sge, %6, %22 : vector<8x256xi32>
    %c15_i32_7 = arith.constant 15 : i32
    %24 = vector.broadcast %c15_i32_7 : i32 to vector<8x256xi32>
    %25 = arith.cmpi slt, %6, %24 : vector<8x256xi32>
    %26 = vector.extract_strided_slice %17 {offsets = [0, 4], sizes = [8, 1], strides = [1, 1]} : vector<8x16xf32> to vector<8x1xf32>
    %27 = vector.broadcast %26 : vector<8x1xf32> to vector<8x256xf32>
    %28 = arith.mulf %16, %27 : vector<8x256xf32>
    %c17_i32 = arith.constant 17 : i32
    %29 = tpu.dynamic_rotate %16 by %c17_i32 dim 1 : vector<8x256xf32>, i32 -> vector<8x256xf32>
    %30 = vector.extract_strided_slice %17 {offsets = [0, 0], sizes = [8, 1], strides = [1, 1]} : vector<8x16xf32> to vector<8x1xf32>
    %31 = vector.broadcast %30 : vector<8x1xf32> to vector<8x256xf32>
    %32 = arith.mulf %29, %31 : vector<8x256xf32>
    %33 = arith.andi %19, %23 : vector<8x256xi1>
    %cst_8 = arith.constant 0.000000e+00 : f32
    %34 = vector.broadcast %cst_8 : f32 to vector<8x256xf32>
    %35 = arith.select %33, %32, %34 : vector<8x256xi1>, vector<8x256xf32>
    %36 = arith.addf %28, %35 : vector<8x256xf32>
    %c16_i32_9 = arith.constant 16 : i32
    %37 = tpu.dynamic_rotate %16 by %c16_i32_9 dim 1 : vector<8x256xf32>, i32 -> vector<8x256xf32>
    %38 = vector.extract_strided_slice %17 {offsets = [0, 1], sizes = [8, 1], strides = [1, 1]} : vector<8x16xf32> to vector<8x1xf32>
    %39 = vector.broadcast %38 : vector<8x1xf32> to vector<8x256xf32>
    %40 = arith.mulf %37, %39 : vector<8x256xf32>
    %cst_10 = arith.constant 0.000000e+00 : f32
    %41 = vector.broadcast %cst_10 : f32 to vector<8x256xf32>
    %42 = arith.select %19, %40, %41 : vector<8x256xi1>, vector<8x256xf32>
    %43 = arith.addf %36, %42 : vector<8x256xf32>
    %c15_i32_11 = arith.constant 15 : i32
    %44 = tpu.dynamic_rotate %16 by %c15_i32_11 dim 1 : vector<8x256xf32>, i32 -> vector<8x256xf32>
    %45 = vector.extract_strided_slice %17 {offsets = [0, 2], sizes = [8, 1], strides = [1, 1]} : vector<8x16xf32> to vector<8x1xf32>
    %46 = vector.broadcast %45 : vector<8x1xf32> to vector<8x256xf32>
    %47 = arith.mulf %44, %46 : vector<8x256xf32>
    %48 = arith.andi %19, %25 : vector<8x256xi1>
    %cst_12 = arith.constant 0.000000e+00 : f32
    %49 = vector.broadcast %cst_12 : f32 to vector<8x256xf32>
    %50 = arith.select %48, %47, %49 : vector<8x256xi1>, vector<8x256xf32>
    %51 = arith.addf %43, %50 : vector<8x256xf32>
    %c1_i32_13 = arith.constant 1 : i32
    %52 = tpu.dynamic_rotate %16 by %c1_i32_13 dim 1 : vector<8x256xf32>, i32 -> vector<8x256xf32>
    %53 = vector.extract_strided_slice %17 {offsets = [0, 3], sizes = [8, 1], strides = [1, 1]} : vector<8x16xf32> to vector<8x1xf32>
    %54 = vector.broadcast %53 : vector<8x1xf32> to vector<8x256xf32>
    %55 = arith.mulf %52, %54 : vector<8x256xf32>
    %cst_14 = arith.constant 0.000000e+00 : f32
    %56 = vector.broadcast %cst_14 : f32 to vector<8x256xf32>
    %57 = arith.select %23, %55, %56 : vector<8x256xi1>, vector<8x256xf32>
    %58 = arith.addf %51, %57 : vector<8x256xf32>
    %c255_i32 = arith.constant 255 : i32
    %59 = tpu.dynamic_rotate %16 by %c255_i32 dim 1 : vector<8x256xf32>, i32 -> vector<8x256xf32>
    %60 = vector.extract_strided_slice %17 {offsets = [0, 5], sizes = [8, 1], strides = [1, 1]} : vector<8x16xf32> to vector<8x1xf32>
    %61 = vector.broadcast %60 : vector<8x1xf32> to vector<8x256xf32>
    %62 = arith.mulf %59, %61 : vector<8x256xf32>
    %cst_15 = arith.constant 0.000000e+00 : f32
    %63 = vector.broadcast %cst_15 : f32 to vector<8x256xf32>
    %64 = arith.select %25, %62, %63 : vector<8x256xi1>, vector<8x256xf32>
    %65 = arith.addf %58, %64 : vector<8x256xf32>
    %c241_i32 = arith.constant 241 : i32
    %66 = tpu.dynamic_rotate %16 by %c241_i32 dim 1 : vector<8x256xf32>, i32 -> vector<8x256xf32>
    %67 = vector.extract_strided_slice %17 {offsets = [0, 6], sizes = [8, 1], strides = [1, 1]} : vector<8x16xf32> to vector<8x1xf32>
    %68 = vector.broadcast %67 : vector<8x1xf32> to vector<8x256xf32>
    %69 = arith.mulf %66, %68 : vector<8x256xf32>
    %70 = arith.andi %21, %23 : vector<8x256xi1>
    %cst_16 = arith.constant 0.000000e+00 : f32
    %71 = vector.broadcast %cst_16 : f32 to vector<8x256xf32>
    %72 = arith.select %70, %69, %71 : vector<8x256xi1>, vector<8x256xf32>
    %73 = arith.addf %65, %72 : vector<8x256xf32>
    %c240_i32_17 = arith.constant 240 : i32
    %74 = tpu.dynamic_rotate %16 by %c240_i32_17 dim 1 : vector<8x256xf32>, i32 -> vector<8x256xf32>
    %75 = vector.extract_strided_slice %17 {offsets = [0, 7], sizes = [8, 1], strides = [1, 1]} : vector<8x16xf32> to vector<8x1xf32>
    %76 = vector.broadcast %75 : vector<8x1xf32> to vector<8x256xf32>
    %77 = arith.mulf %74, %76 : vector<8x256xf32>
    %cst_18 = arith.constant 0.000000e+00 : f32
    %78 = vector.broadcast %cst_18 : f32 to vector<8x256xf32>
    %79 = arith.select %21, %77, %78 : vector<8x256xi1>, vector<8x256xf32>
    %80 = arith.addf %73, %79 : vector<8x256xf32>
    %c239_i32 = arith.constant 239 : i32
    %81 = tpu.dynamic_rotate %16 by %c239_i32 dim 1 : vector<8x256xf32>, i32 -> vector<8x256xf32>
    %82 = vector.extract_strided_slice %17 {offsets = [0, 8], sizes = [8, 1], strides = [1, 1]} : vector<8x16xf32> to vector<8x1xf32>
    %83 = vector.broadcast %82 : vector<8x1xf32> to vector<8x256xf32>
    %84 = arith.mulf %81, %83 : vector<8x256xf32>
    %85 = arith.andi %21, %25 : vector<8x256xi1>
    %cst_19 = arith.constant 0.000000e+00 : f32
    %86 = vector.broadcast %cst_19 : f32 to vector<8x256xf32>
    %87 = arith.select %85, %84, %86 : vector<8x256xi1>, vector<8x256xf32>
    %88 = arith.addf %80, %87 : vector<8x256xf32>
    %89 = vector.extract_strided_slice %17 {offsets = [0, 9], sizes = [8, 1], strides = [1, 1]} : vector<8x16xf32> to vector<8x1xf32>
    %90 = vector.broadcast %89 : vector<8x1xf32> to vector<8x256xf32>
    %91 = arith.addf %88, %90 : vector<8x256xf32>
    %cst_20 = arith.constant 0.000000e+00 : f32
    %92 = vector.broadcast %cst_20 : f32 to vector<8x256xf32>
    %93 = arith.maximumf %91, %92 : vector<8x256xf32>
    %c0_21 = arith.constant 0 : index
    %c0_22 = arith.constant 0 : index
    %c0_23 = arith.constant 0 : index
    %94 = vector.load %arg3[%c0_21, %c0_22, %c0_23] : memref<4x32x8xf32, #tpu.memory_space<vmem>>, vector<1x32x8xf32>
    %95 = vector.shape_cast %94 : vector<1x32x8xf32> to vector<32x8xf32>
    %cst_24 = arith.constant dense<0.000000e+00> : vector<32x256xf32>
    %96 = tpu.matmul %95, %93, %cst_24 {dimension_numbers = #tpu.dot_dimension_numbers<[1], [0], [0], [1], [0, 0, 1, 1], [], []>} : vector<32x8xf32>, vector<8x256xf32>, vector<32x256xf32> -> vector<32x256xf32>
    %97 = arith.addf %15, %96 : vector<32x256xf32>
    %98 = vector.extract_strided_slice %13 {offsets = [8, 0], sizes = [8, 256], strides = [1, 1]} : vector<32x256xf32> to vector<8x256xf32>
    %99 = arith.addf %98, %93 : vector<8x256xf32>
    %100 = vector.extract_strided_slice %1 {offsets = [8, 0], sizes = [8, 16], strides = [1, 1]} : vector<32x16xf32> to vector<8x16xf32>
    %c32_i32 = arith.constant 32 : i32
    %101 = vector.broadcast %c32_i32 : i32 to vector<8x256xi32>
    %102 = arith.cmpi sge, %4, %101 : vector<8x256xi32>
    %c224_i32 = arith.constant 224 : i32
    %103 = vector.broadcast %c224_i32 : i32 to vector<8x256xi32>
    %104 = arith.cmpi slt, %4, %103 : vector<8x256xi32>
    %c2_i32 = arith.constant 2 : i32
    %105 = vector.broadcast %c2_i32 : i32 to vector<8x256xi32>
    %106 = arith.cmpi sge, %6, %105 : vector<8x256xi32>
    %c14_i32 = arith.constant 14 : i32
    %107 = vector.broadcast %c14_i32 : i32 to vector<8x256xi32>
    %108 = arith.cmpi slt, %6, %107 : vector<8x256xi32>
    %109 = vector.extract_strided_slice %100 {offsets = [0, 4], sizes = [8, 1], strides = [1, 1]} : vector<8x16xf32> to vector<8x1xf32>
    %110 = vector.broadcast %109 : vector<8x1xf32> to vector<8x256xf32>
    %111 = arith.mulf %99, %110 : vector<8x256xf32>
    %c34_i32 = arith.constant 34 : i32
    %112 = tpu.dynamic_rotate %99 by %c34_i32 dim 1 : vector<8x256xf32>, i32 -> vector<8x256xf32>
    %113 = vector.extract_strided_slice %100 {offsets = [0, 0], sizes = [8, 1], strides = [1, 1]} : vector<8x16xf32> to vector<8x1xf32>
    %114 = vector.broadcast %113 : vector<8x1xf32> to vector<8x256xf32>
    %115 = arith.mulf %112, %114 : vector<8x256xf32>
    %116 = arith.andi %102, %106 : vector<8x256xi1>
    %cst_25 = arith.constant 0.000000e+00 : f32
    %117 = vector.broadcast %cst_25 : f32 to vector<8x256xf32>
    %118 = arith.select %116, %115, %117 : vector<8x256xi1>, vector<8x256xf32>
    %119 = arith.addf %111, %118 : vector<8x256xf32>
    %c32_i32_26 = arith.constant 32 : i32
    %120 = tpu.dynamic_rotate %99 by %c32_i32_26 dim 1 : vector<8x256xf32>, i32 -> vector<8x256xf32>
    %121 = vector.extract_strided_slice %100 {offsets = [0, 1], sizes = [8, 1], strides = [1, 1]} : vector<8x16xf32> to vector<8x1xf32>
    %122 = vector.broadcast %121 : vector<8x1xf32> to vector<8x256xf32>
    %123 = arith.mulf %120, %122 : vector<8x256xf32>
    %cst_27 = arith.constant 0.000000e+00 : f32
    %124 = vector.broadcast %cst_27 : f32 to vector<8x256xf32>
    %125 = arith.select %102, %123, %124 : vector<8x256xi1>, vector<8x256xf32>
    %126 = arith.addf %119, %125 : vector<8x256xf32>
    %c30_i32 = arith.constant 30 : i32
    %127 = tpu.dynamic_rotate %99 by %c30_i32 dim 1 : vector<8x256xf32>, i32 -> vector<8x256xf32>
    %128 = vector.extract_strided_slice %100 {offsets = [0, 2], sizes = [8, 1], strides = [1, 1]} : vector<8x16xf32> to vector<8x1xf32>
    %129 = vector.broadcast %128 : vector<8x1xf32> to vector<8x256xf32>
    %130 = arith.mulf %127, %129 : vector<8x256xf32>
    %131 = arith.andi %102, %108 : vector<8x256xi1>
    %cst_28 = arith.constant 0.000000e+00 : f32
    %132 = vector.broadcast %cst_28 : f32 to vector<8x256xf32>
    %133 = arith.select %131, %130, %132 : vector<8x256xi1>, vector<8x256xf32>
    %134 = arith.addf %126, %133 : vector<8x256xf32>
    %c2_i32_29 = arith.constant 2 : i32
    %135 = tpu.dynamic_rotate %99 by %c2_i32_29 dim 1 : vector<8x256xf32>, i32 -> vector<8x256xf32>
    %136 = vector.extract_strided_slice %100 {offsets = [0, 3], sizes = [8, 1], strides = [1, 1]} : vector<8x16xf32> to vector<8x1xf32>
    %137 = vector.broadcast %136 : vector<8x1xf32> to vector<8x256xf32>
    %138 = arith.mulf %135, %137 : vector<8x256xf32>
    %cst_30 = arith.constant 0.000000e+00 : f32
    %139 = vector.broadcast %cst_30 : f32 to vector<8x256xf32>
    %140 = arith.select %106, %138, %139 : vector<8x256xi1>, vector<8x256xf32>
    %141 = arith.addf %134, %140 : vector<8x256xf32>
    %c254_i32 = arith.constant 254 : i32
    %142 = tpu.dynamic_rotate %99 by %c254_i32 dim 1 : vector<8x256xf32>, i32 -> vector<8x256xf32>
    %143 = vector.extract_strided_slice %100 {offsets = [0, 5], sizes = [8, 1], strides = [1, 1]} : vector<8x16xf32> to vector<8x1xf32>
    %144 = vector.broadcast %143 : vector<8x1xf32> to vector<8x256xf32>
    %145 = arith.mulf %142, %144 : vector<8x256xf32>
    %cst_31 = arith.constant 0.000000e+00 : f32
    %146 = vector.broadcast %cst_31 : f32 to vector<8x256xf32>
    %147 = arith.select %108, %145, %146 : vector<8x256xi1>, vector<8x256xf32>
    %148 = arith.addf %141, %147 : vector<8x256xf32>
    %c226_i32 = arith.constant 226 : i32
    %149 = tpu.dynamic_rotate %99 by %c226_i32 dim 1 : vector<8x256xf32>, i32 -> vector<8x256xf32>
    %150 = vector.extract_strided_slice %100 {offsets = [0, 6], sizes = [8, 1], strides = [1, 1]} : vector<8x16xf32> to vector<8x1xf32>
    %151 = vector.broadcast %150 : vector<8x1xf32> to vector<8x256xf32>
    %152 = arith.mulf %149, %151 : vector<8x256xf32>
    %153 = arith.andi %104, %106 : vector<8x256xi1>
    %cst_32 = arith.constant 0.000000e+00 : f32
    %154 = vector.broadcast %cst_32 : f32 to vector<8x256xf32>
    %155 = arith.select %153, %152, %154 : vector<8x256xi1>, vector<8x256xf32>
    %156 = arith.addf %148, %155 : vector<8x256xf32>
    %c224_i32_33 = arith.constant 224 : i32
    %157 = tpu.dynamic_rotate %99 by %c224_i32_33 dim 1 : vector<8x256xf32>, i32 -> vector<8x256xf32>
    %158 = vector.extract_strided_slice %100 {offsets = [0, 7], sizes = [8, 1], strides = [1, 1]} : vector<8x16xf32> to vector<8x1xf32>
    %159 = vector.broadcast %158 : vector<8x1xf32> to vector<8x256xf32>
    %160 = arith.mulf %157, %159 : vector<8x256xf32>
    %cst_34 = arith.constant 0.000000e+00 : f32
    %161 = vector.broadcast %cst_34 : f32 to vector<8x256xf32>
    %162 = arith.select %104, %160, %161 : vector<8x256xi1>, vector<8x256xf32>
    %163 = arith.addf %156, %162 : vector<8x256xf32>
    %c222_i32 = arith.constant 222 : i32
    %164 = tpu.dynamic_rotate %99 by %c222_i32 dim 1 : vector<8x256xf32>, i32 -> vector<8x256xf32>
    %165 = vector.extract_strided_slice %100 {offsets = [0, 8], sizes = [8, 1], strides = [1, 1]} : vector<8x16xf32> to vector<8x1xf32>
    %166 = vector.broadcast %165 : vector<8x1xf32> to vector<8x256xf32>
    %167 = arith.mulf %164, %166 : vector<8x256xf32>
    %168 = arith.andi %104, %108 : vector<8x256xi1>
    %cst_35 = arith.constant 0.000000e+00 : f32
    %169 = vector.broadcast %cst_35 : f32 to vector<8x256xf32>
    %170 = arith.select %168, %167, %169 : vector<8x256xi1>, vector<8x256xf32>
    %171 = arith.addf %163, %170 : vector<8x256xf32>
    %172 = vector.extract_strided_slice %100 {offsets = [0, 9], sizes = [8, 1], strides = [1, 1]} : vector<8x16xf32> to vector<8x1xf32>
    %173 = vector.broadcast %172 : vector<8x1xf32> to vector<8x256xf32>
    %174 = arith.addf %171, %173 : vector<8x256xf32>
    %cst_36 = arith.constant 0.000000e+00 : f32
    %175 = vector.broadcast %cst_36 : f32 to vector<8x256xf32>
    %176 = arith.maximumf %174, %175 : vector<8x256xf32>
    %c1 = arith.constant 1 : index
    %c0_37 = arith.constant 0 : index
    %c0_38 = arith.constant 0 : index
    %177 = vector.load %arg3[%c1, %c0_37, %c0_38] : memref<4x32x8xf32, #tpu.memory_space<vmem>>, vector<1x32x8xf32>
    %178 = vector.shape_cast %177 : vector<1x32x8xf32> to vector<32x8xf32>
    %cst_39 = arith.constant dense<0.000000e+00> : vector<32x256xf32>
    %179 = tpu.matmul %178, %176, %cst_39 {dimension_numbers = #tpu.dot_dimension_numbers<[1], [0], [0], [1], [0, 0, 1, 1], [], []>} : vector<32x8xf32>, vector<8x256xf32>, vector<32x256xf32> -> vector<32x256xf32>
    %180 = arith.addf %97, %179 : vector<32x256xf32>
    %181 = vector.extract_strided_slice %13 {offsets = [16, 0], sizes = [8, 256], strides = [1, 1]} : vector<32x256xf32> to vector<8x256xf32>
    %182 = arith.addf %181, %176 : vector<8x256xf32>
    %183 = vector.extract_strided_slice %1 {offsets = [16, 0], sizes = [8, 16], strides = [1, 1]} : vector<32x16xf32> to vector<8x16xf32>
    %c48_i32 = arith.constant 48 : i32
    %184 = vector.broadcast %c48_i32 : i32 to vector<8x256xi32>
    %185 = arith.cmpi sge, %4, %184 : vector<8x256xi32>
    %c208_i32 = arith.constant 208 : i32
    %186 = vector.broadcast %c208_i32 : i32 to vector<8x256xi32>
    %187 = arith.cmpi slt, %4, %186 : vector<8x256xi32>
    %c3_i32 = arith.constant 3 : i32
    %188 = vector.broadcast %c3_i32 : i32 to vector<8x256xi32>
    %189 = arith.cmpi sge, %6, %188 : vector<8x256xi32>
    %c13_i32 = arith.constant 13 : i32
    %190 = vector.broadcast %c13_i32 : i32 to vector<8x256xi32>
    %191 = arith.cmpi slt, %6, %190 : vector<8x256xi32>
    %192 = vector.extract_strided_slice %183 {offsets = [0, 4], sizes = [8, 1], strides = [1, 1]} : vector<8x16xf32> to vector<8x1xf32>
    %193 = vector.broadcast %192 : vector<8x1xf32> to vector<8x256xf32>
    %194 = arith.mulf %182, %193 : vector<8x256xf32>
    %c51_i32 = arith.constant 51 : i32
    %195 = tpu.dynamic_rotate %182 by %c51_i32 dim 1 : vector<8x256xf32>, i32 -> vector<8x256xf32>
    %196 = vector.extract_strided_slice %183 {offsets = [0, 0], sizes = [8, 1], strides = [1, 1]} : vector<8x16xf32> to vector<8x1xf32>
    %197 = vector.broadcast %196 : vector<8x1xf32> to vector<8x256xf32>
    %198 = arith.mulf %195, %197 : vector<8x256xf32>
    %199 = arith.andi %185, %189 : vector<8x256xi1>
    %cst_40 = arith.constant 0.000000e+00 : f32
    %200 = vector.broadcast %cst_40 : f32 to vector<8x256xf32>
    %201 = arith.select %199, %198, %200 : vector<8x256xi1>, vector<8x256xf32>
    %202 = arith.addf %194, %201 : vector<8x256xf32>
    %c48_i32_41 = arith.constant 48 : i32
    %203 = tpu.dynamic_rotate %182 by %c48_i32_41 dim 1 : vector<8x256xf32>, i32 -> vector<8x256xf32>
    %204 = vector.extract_strided_slice %183 {offsets = [0, 1], sizes = [8, 1], strides = [1, 1]} : vector<8x16xf32> to vector<8x1xf32>
    %205 = vector.broadcast %204 : vector<8x1xf32> to vector<8x256xf32>
    %206 = arith.mulf %203, %205 : vector<8x256xf32>
    %cst_42 = arith.constant 0.000000e+00 : f32
    %207 = vector.broadcast %cst_42 : f32 to vector<8x256xf32>
    %208 = arith.select %185, %206, %207 : vector<8x256xi1>, vector<8x256xf32>
    %209 = arith.addf %202, %208 : vector<8x256xf32>
    %c45_i32 = arith.constant 45 : i32
    %210 = tpu.dynamic_rotate %182 by %c45_i32 dim 1 : vector<8x256xf32>, i32 -> vector<8x256xf32>
    %211 = vector.extract_strided_slice %183 {offsets = [0, 2], sizes = [8, 1], strides = [1, 1]} : vector<8x16xf32> to vector<8x1xf32>
    %212 = vector.broadcast %211 : vector<8x1xf32> to vector<8x256xf32>
    %213 = arith.mulf %210, %212 : vector<8x256xf32>
    %214 = arith.andi %185, %191 : vector<8x256xi1>
    %cst_43 = arith.constant 0.000000e+00 : f32
    %215 = vector.broadcast %cst_43 : f32 to vector<8x256xf32>
    %216 = arith.select %214, %213, %215 : vector<8x256xi1>, vector<8x256xf32>
    %217 = arith.addf %209, %216 : vector<8x256xf32>
    %c3_i32_44 = arith.constant 3 : i32
    %218 = tpu.dynamic_rotate %182 by %c3_i32_44 dim 1 : vector<8x256xf32>, i32 -> vector<8x256xf32>
    %219 = vector.extract_strided_slice %183 {offsets = [0, 3], sizes = [8, 1], strides = [1, 1]} : vector<8x16xf32> to vector<8x1xf32>
    %220 = vector.broadcast %219 : vector<8x1xf32> to vector<8x256xf32>
    %221 = arith.mulf %218, %220 : vector<8x256xf32>
    %cst_45 = arith.constant 0.000000e+00 : f32
    %222 = vector.broadcast %cst_45 : f32 to vector<8x256xf32>
    %223 = arith.select %189, %221, %222 : vector<8x256xi1>, vector<8x256xf32>
    %224 = arith.addf %217, %223 : vector<8x256xf32>
    %c253_i32 = arith.constant 253 : i32
    %225 = tpu.dynamic_rotate %182 by %c253_i32 dim 1 : vector<8x256xf32>, i32 -> vector<8x256xf32>
    %226 = vector.extract_strided_slice %183 {offsets = [0, 5], sizes = [8, 1], strides = [1, 1]} : vector<8x16xf32> to vector<8x1xf32>
    %227 = vector.broadcast %226 : vector<8x1xf32> to vector<8x256xf32>
    %228 = arith.mulf %225, %227 : vector<8x256xf32>
    %cst_46 = arith.constant 0.000000e+00 : f32
    %229 = vector.broadcast %cst_46 : f32 to vector<8x256xf32>
    %230 = arith.select %191, %228, %229 : vector<8x256xi1>, vector<8x256xf32>
    %231 = arith.addf %224, %230 : vector<8x256xf32>
    %c211_i32 = arith.constant 211 : i32
    %232 = tpu.dynamic_rotate %182 by %c211_i32 dim 1 : vector<8x256xf32>, i32 -> vector<8x256xf32>
    %233 = vector.extract_strided_slice %183 {offsets = [0, 6], sizes = [8, 1], strides = [1, 1]} : vector<8x16xf32> to vector<8x1xf32>
    %234 = vector.broadcast %233 : vector<8x1xf32> to vector<8x256xf32>
    %235 = arith.mulf %232, %234 : vector<8x256xf32>
    %236 = arith.andi %187, %189 : vector<8x256xi1>
    %cst_47 = arith.constant 0.000000e+00 : f32
    %237 = vector.broadcast %cst_47 : f32 to vector<8x256xf32>
    %238 = arith.select %236, %235, %237 : vector<8x256xi1>, vector<8x256xf32>
    %239 = arith.addf %231, %238 : vector<8x256xf32>
    %c208_i32_48 = arith.constant 208 : i32
    %240 = tpu.dynamic_rotate %182 by %c208_i32_48 dim 1 : vector<8x256xf32>, i32 -> vector<8x256xf32>
    %241 = vector.extract_strided_slice %183 {offsets = [0, 7], sizes = [8, 1], strides = [1, 1]} : vector<8x16xf32> to vector<8x1xf32>
    %242 = vector.broadcast %241 : vector<8x1xf32> to vector<8x256xf32>
    %243 = arith.mulf %240, %242 : vector<8x256xf32>
    %cst_49 = arith.constant 0.000000e+00 : f32
    %244 = vector.broadcast %cst_49 : f32 to vector<8x256xf32>
    %245 = arith.select %187, %243, %244 : vector<8x256xi1>, vector<8x256xf32>
    %246 = arith.addf %239, %245 : vector<8x256xf32>
    %c205_i32 = arith.constant 205 : i32
    %247 = tpu.dynamic_rotate %182 by %c205_i32 dim 1 : vector<8x256xf32>, i32 -> vector<8x256xf32>
    %248 = vector.extract_strided_slice %183 {offsets = [0, 8], sizes = [8, 1], strides = [1, 1]} : vector<8x16xf32> to vector<8x1xf32>
    %249 = vector.broadcast %248 : vector<8x1xf32> to vector<8x256xf32>
    %250 = arith.mulf %247, %249 : vector<8x256xf32>
    %251 = arith.andi %187, %191 : vector<8x256xi1>
    %cst_50 = arith.constant 0.000000e+00 : f32
    %252 = vector.broadcast %cst_50 : f32 to vector<8x256xf32>
    %253 = arith.select %251, %250, %252 : vector<8x256xi1>, vector<8x256xf32>
    %254 = arith.addf %246, %253 : vector<8x256xf32>
    %255 = vector.extract_strided_slice %183 {offsets = [0, 9], sizes = [8, 1], strides = [1, 1]} : vector<8x16xf32> to vector<8x1xf32>
    %256 = vector.broadcast %255 : vector<8x1xf32> to vector<8x256xf32>
    %257 = arith.addf %254, %256 : vector<8x256xf32>
    %cst_51 = arith.constant 0.000000e+00 : f32
    %258 = vector.broadcast %cst_51 : f32 to vector<8x256xf32>
    %259 = arith.maximumf %257, %258 : vector<8x256xf32>
    %c2 = arith.constant 2 : index
    %c0_52 = arith.constant 0 : index
    %c0_53 = arith.constant 0 : index
    %260 = vector.load %arg3[%c2, %c0_52, %c0_53] : memref<4x32x8xf32, #tpu.memory_space<vmem>>, vector<1x32x8xf32>
    %261 = vector.shape_cast %260 : vector<1x32x8xf32> to vector<32x8xf32>
    %cst_54 = arith.constant dense<0.000000e+00> : vector<32x256xf32>
    %262 = tpu.matmul %261, %259, %cst_54 {dimension_numbers = #tpu.dot_dimension_numbers<[1], [0], [0], [1], [0, 0, 1, 1], [], []>} : vector<32x8xf32>, vector<8x256xf32>, vector<32x256xf32> -> vector<32x256xf32>
    %263 = arith.addf %180, %262 : vector<32x256xf32>
    %264 = vector.extract_strided_slice %13 {offsets = [24, 0], sizes = [8, 256], strides = [1, 1]} : vector<32x256xf32> to vector<8x256xf32>
    %265 = arith.addf %264, %259 : vector<8x256xf32>
    %266 = vector.extract_strided_slice %1 {offsets = [24, 0], sizes = [8, 16], strides = [1, 1]} : vector<32x16xf32> to vector<8x16xf32>
    %c64_i32 = arith.constant 64 : i32
    %267 = vector.broadcast %c64_i32 : i32 to vector<8x256xi32>
    %268 = arith.cmpi sge, %4, %267 : vector<8x256xi32>
    %c192_i32 = arith.constant 192 : i32
    %269 = vector.broadcast %c192_i32 : i32 to vector<8x256xi32>
    %270 = arith.cmpi slt, %4, %269 : vector<8x256xi32>
    %c4_i32 = arith.constant 4 : i32
    %271 = vector.broadcast %c4_i32 : i32 to vector<8x256xi32>
    %272 = arith.cmpi sge, %6, %271 : vector<8x256xi32>
    %c12_i32 = arith.constant 12 : i32
    %273 = vector.broadcast %c12_i32 : i32 to vector<8x256xi32>
    %274 = arith.cmpi slt, %6, %273 : vector<8x256xi32>
    %275 = vector.extract_strided_slice %266 {offsets = [0, 4], sizes = [8, 1], strides = [1, 1]} : vector<8x16xf32> to vector<8x1xf32>
    %276 = vector.broadcast %275 : vector<8x1xf32> to vector<8x256xf32>
    %277 = arith.mulf %265, %276 : vector<8x256xf32>
    %c68_i32 = arith.constant 68 : i32
    %278 = tpu.dynamic_rotate %265 by %c68_i32 dim 1 : vector<8x256xf32>, i32 -> vector<8x256xf32>
    %279 = vector.extract_strided_slice %266 {offsets = [0, 0], sizes = [8, 1], strides = [1, 1]} : vector<8x16xf32> to vector<8x1xf32>
    %280 = vector.broadcast %279 : vector<8x1xf32> to vector<8x256xf32>
    %281 = arith.mulf %278, %280 : vector<8x256xf32>
    %282 = arith.andi %268, %272 : vector<8x256xi1>
    %cst_55 = arith.constant 0.000000e+00 : f32
    %283 = vector.broadcast %cst_55 : f32 to vector<8x256xf32>
    %284 = arith.select %282, %281, %283 : vector<8x256xi1>, vector<8x256xf32>
    %285 = arith.addf %277, %284 : vector<8x256xf32>
    %c64_i32_56 = arith.constant 64 : i32
    %286 = tpu.dynamic_rotate %265 by %c64_i32_56 dim 1 : vector<8x256xf32>, i32 -> vector<8x256xf32>
    %287 = vector.extract_strided_slice %266 {offsets = [0, 1], sizes = [8, 1], strides = [1, 1]} : vector<8x16xf32> to vector<8x1xf32>
    %288 = vector.broadcast %287 : vector<8x1xf32> to vector<8x256xf32>
    %289 = arith.mulf %286, %288 : vector<8x256xf32>
    %cst_57 = arith.constant 0.000000e+00 : f32
    %290 = vector.broadcast %cst_57 : f32 to vector<8x256xf32>
    %291 = arith.select %268, %289, %290 : vector<8x256xi1>, vector<8x256xf32>
    %292 = arith.addf %285, %291 : vector<8x256xf32>
    %c60_i32 = arith.constant 60 : i32
    %293 = tpu.dynamic_rotate %265 by %c60_i32 dim 1 : vector<8x256xf32>, i32 -> vector<8x256xf32>
    %294 = vector.extract_strided_slice %266 {offsets = [0, 2], sizes = [8, 1], strides = [1, 1]} : vector<8x16xf32> to vector<8x1xf32>
    %295 = vector.broadcast %294 : vector<8x1xf32> to vector<8x256xf32>
    %296 = arith.mulf %293, %295 : vector<8x256xf32>
    %297 = arith.andi %268, %274 : vector<8x256xi1>
    %cst_58 = arith.constant 0.000000e+00 : f32
    %298 = vector.broadcast %cst_58 : f32 to vector<8x256xf32>
    %299 = arith.select %297, %296, %298 : vector<8x256xi1>, vector<8x256xf32>
    %300 = arith.addf %292, %299 : vector<8x256xf32>
    %c4_i32_59 = arith.constant 4 : i32
    %301 = tpu.dynamic_rotate %265 by %c4_i32_59 dim 1 : vector<8x256xf32>, i32 -> vector<8x256xf32>
    %302 = vector.extract_strided_slice %266 {offsets = [0, 3], sizes = [8, 1], strides = [1, 1]} : vector<8x16xf32> to vector<8x1xf32>
    %303 = vector.broadcast %302 : vector<8x1xf32> to vector<8x256xf32>
    %304 = arith.mulf %301, %303 : vector<8x256xf32>
    %cst_60 = arith.constant 0.000000e+00 : f32
    %305 = vector.broadcast %cst_60 : f32 to vector<8x256xf32>
    %306 = arith.select %272, %304, %305 : vector<8x256xi1>, vector<8x256xf32>
    %307 = arith.addf %300, %306 : vector<8x256xf32>
    %c252_i32 = arith.constant 252 : i32
    %308 = tpu.dynamic_rotate %265 by %c252_i32 dim 1 : vector<8x256xf32>, i32 -> vector<8x256xf32>
    %309 = vector.extract_strided_slice %266 {offsets = [0, 5], sizes = [8, 1], strides = [1, 1]} : vector<8x16xf32> to vector<8x1xf32>
    %310 = vector.broadcast %309 : vector<8x1xf32> to vector<8x256xf32>
    %311 = arith.mulf %308, %310 : vector<8x256xf32>
    %cst_61 = arith.constant 0.000000e+00 : f32
    %312 = vector.broadcast %cst_61 : f32 to vector<8x256xf32>
    %313 = arith.select %274, %311, %312 : vector<8x256xi1>, vector<8x256xf32>
    %314 = arith.addf %307, %313 : vector<8x256xf32>
    %c196_i32 = arith.constant 196 : i32
    %315 = tpu.dynamic_rotate %265 by %c196_i32 dim 1 : vector<8x256xf32>, i32 -> vector<8x256xf32>
    %316 = vector.extract_strided_slice %266 {offsets = [0, 6], sizes = [8, 1], strides = [1, 1]} : vector<8x16xf32> to vector<8x1xf32>
    %317 = vector.broadcast %316 : vector<8x1xf32> to vector<8x256xf32>
    %318 = arith.mulf %315, %317 : vector<8x256xf32>
    %319 = arith.andi %270, %272 : vector<8x256xi1>
    %cst_62 = arith.constant 0.000000e+00 : f32
    %320 = vector.broadcast %cst_62 : f32 to vector<8x256xf32>
    %321 = arith.select %319, %318, %320 : vector<8x256xi1>, vector<8x256xf32>
    %322 = arith.addf %314, %321 : vector<8x256xf32>
    %c192_i32_63 = arith.constant 192 : i32
    %323 = tpu.dynamic_rotate %265 by %c192_i32_63 dim 1 : vector<8x256xf32>, i32 -> vector<8x256xf32>
    %324 = vector.extract_strided_slice %266 {offsets = [0, 7], sizes = [8, 1], strides = [1, 1]} : vector<8x16xf32> to vector<8x1xf32>
    %325 = vector.broadcast %324 : vector<8x1xf32> to vector<8x256xf32>
    %326 = arith.mulf %323, %325 : vector<8x256xf32>
    %cst_64 = arith.constant 0.000000e+00 : f32
    %327 = vector.broadcast %cst_64 : f32 to vector<8x256xf32>
    %328 = arith.select %270, %326, %327 : vector<8x256xi1>, vector<8x256xf32>
    %329 = arith.addf %322, %328 : vector<8x256xf32>
    %c188_i32 = arith.constant 188 : i32
    %330 = tpu.dynamic_rotate %265 by %c188_i32 dim 1 : vector<8x256xf32>, i32 -> vector<8x256xf32>
    %331 = vector.extract_strided_slice %266 {offsets = [0, 8], sizes = [8, 1], strides = [1, 1]} : vector<8x16xf32> to vector<8x1xf32>
    %332 = vector.broadcast %331 : vector<8x1xf32> to vector<8x256xf32>
    %333 = arith.mulf %330, %332 : vector<8x256xf32>
    %334 = arith.andi %270, %274 : vector<8x256xi1>
    %cst_65 = arith.constant 0.000000e+00 : f32
    %335 = vector.broadcast %cst_65 : f32 to vector<8x256xf32>
    %336 = arith.select %334, %333, %335 : vector<8x256xi1>, vector<8x256xf32>
    %337 = arith.addf %329, %336 : vector<8x256xf32>
    %338 = vector.extract_strided_slice %266 {offsets = [0, 9], sizes = [8, 1], strides = [1, 1]} : vector<8x16xf32> to vector<8x1xf32>
    %339 = vector.broadcast %338 : vector<8x1xf32> to vector<8x256xf32>
    %340 = arith.addf %337, %339 : vector<8x256xf32>
    %cst_66 = arith.constant 0.000000e+00 : f32
    %341 = vector.broadcast %cst_66 : f32 to vector<8x256xf32>
    %342 = arith.maximumf %340, %341 : vector<8x256xf32>
    %c3 = arith.constant 3 : index
    %c0_67 = arith.constant 0 : index
    %c0_68 = arith.constant 0 : index
    %343 = vector.load %arg3[%c3, %c0_67, %c0_68] : memref<4x32x8xf32, #tpu.memory_space<vmem>>, vector<1x32x8xf32>
    %344 = vector.shape_cast %343 : vector<1x32x8xf32> to vector<32x8xf32>
    %cst_69 = arith.constant dense<0.000000e+00> : vector<32x256xf32>
    %345 = tpu.matmul %344, %342, %cst_69 {dimension_numbers = #tpu.dot_dimension_numbers<[1], [0], [0], [1], [0, 0, 1, 1], [], []>} : vector<32x8xf32>, vector<8x256xf32>, vector<32x256xf32> -> vector<32x256xf32>
    %346 = arith.addf %263, %345 : vector<32x256xf32>
    %cst_70 = arith.constant 0.000000e+00 : f32
    %347 = vector.broadcast %cst_70 : f32 to vector<32x256xf32>
    %348 = arith.maximumf %346, %347 : vector<32x256xf32>
    %c0_71 = arith.constant 0 : index
    %c0_72 = arith.constant 0 : index
    %c0_73 = arith.constant 0 : index
    %349 = vector.load %arg5[%c0_71, %c0_72, %c0_73] : memref<1x32x256xf32, #tpu.memory_space<vmem>>, vector<1x32x256xf32>
    %350 = vector.shape_cast %349 : vector<1x32x256xf32> to vector<32x256xf32>
    %351 = vector.shape_cast %348 : vector<32x256xf32> to vector<1x32x256xf32>
    tpu.vector_store %arg5[%c0_71, %c0_72, %c0_73], %351 {strides = array<i32>} : memref<1x32x256xf32, #tpu.memory_space<vmem>>, vector<1x32x256xf32>,
    return
  }
  func.func @transform_0(%arg0: i32) -> (i32, i32, i32) {
    %c0_i32 = arith.constant 0 : i32
    %c0_i32_0 = arith.constant 0 : i32
    %c0_i32_1 = arith.constant 0 : i32
    return %arg0, %c0_i32, %c0_i32_0 : i32, i32, i32
  }
  func.func @transform_1(%arg0: i32) -> (i32, i32) {
    %c0_i32 = arith.constant 0 : i32
    %c0_i32_0 = arith.constant 0 : i32
    %c0_i32_1 = arith.constant 0 : i32
    return %c0_i32, %c0_i32_0 : i32, i32
  }
  func.func @transform_2(%arg0: i32) -> (i32, i32, i32) {
    %c0_i32 = arith.constant 0 : i32
    %c0_i32_0 = arith.constant 0 : i32
    %c0_i32_1 = arith.constant 0 : i32
    %c0_i32_2 = arith.constant 0 : i32
    return %c0_i32, %c0_i32_0, %c0_i32_1 : i32, i32, i32
  }
  func.func @transform_3(%arg0: i32) -> (i32, i32) {
    %c0_i32 = arith.constant 0 : i32
    %c0_i32_0 = arith.constant 0 : i32
    %c0_i32_1 = arith.constant 0 : i32
    return %c0_i32, %c0_i32_0 : i32, i32
  }
  func.func @transform_4(%arg0: i32) -> (i32, i32, i32) {
    %c0_i32 = arith.constant 0 : i32
    %c0_i32_0 = arith.constant 0 : i32
    %c0_i32_1 = arith.constant 0 : i32
    return %arg0, %c0_i32, %c0_i32_0 : i32, i32, i32
  }
}

</mosaic_0001>

<bundles_post_ra>
// kernel: tpu_custom_call.1
= control target key start
LH: loop header
LB: loop body
LE: loop exit
PB: predicated region body
PF: predicated region fallthrough
CT: control target
= control target key end

     0   :  { %9 = vsyncpa [#allocation3], 0  ;;  %s2750_s0 = inlined_call_operand.vmem [shape: f32[2,32,256], index: 0, kind: input, shape index: {}]   ;;  %s2751_s1 = inlined_call_operand.vmem [shape: f32[32,32], index: 1, kind: input, shape index: {}]   ;;  %s2752_s2 = inlined_call_operand.vmem [shape: f32[4,32,8], index: 2, kind: input, shape index: {}]   ;;  %s2753_s3 = inlined_call_operand.vmem [shape: f32[32,16], index: 3, kind: input, shape index: {}]   ;;  %s2754_s4 = inlined_call_operand.hbm [shape: f32[2,32,256], index: 4, kind: output, shape index: {}]  }
   0x1   :  { %11 = vsyncpa [#allocation3 + $0x1], 0  ;;  %s1928_s15 = smov 0   ;;  %s1930_s16 = smov 0  }
   0x2   :  { %s1932_s17 = smov 0   ;;  %s1934_s18 = smov 0  }
   0x3 LB: > { %s1949_s19 = sadd.s32 4294967295, %s1857_s18   ;;  %s1568_s20 = sadd.s32 4294967294, %s1857_s18   ;;  %s1857_s18 = sphi %s1934_s18, %s2782_s18   ;;  %s1853_s17 = sphi %s1932_s17, %s2781_s17   ;;  %s1849_s16 = sphi %s1930_s16, %s2780_s16   ;;  %s1845_s15 = sphi %s1928_s15, %s2779_s15  }
   0x4   : > { %s1953_s21 = sadd.s32 1, %s1857_s18   ;;  %s113_s22 = sadd.s32 1, %s1853_s17 }
   0x5   : > { %s110_s23 = ssub.s32 %s1857_s18, %s1953_s21  ;;  %p123_p0 = scmp.ne.s32.totalorder %s1853_s17, %s1849_s16 }
   0x6   : > { %p111_p1 = scmp.eq.s32.totalorder %s110_s23, 0  ;;  %p124_p2 = scmp.eq.s32.totalorder %s1949_s19, 1 }
   0x7   : > { %p129_p3 = scmp.ne.s32.totalorder %s1849_s16, %s1845_s15  ;;  %p130_p4 = scmp.eq.s32.totalorder %s1568_s20, 1 }
   0x8   : > { %s1964_s24 = scalar_select %p111_p1, %s1853_s17, %s113_s22  }
   0x9   : > { %p1966_p5 = por %p124_p2, %p123_p0  ;;  %p1970_p6 = por %p130_p4, %p129_p3 }
   0xa   : > { %p1571_p7 = scmp.ge.s32.totalorder %s1857_s18, 1  ;;  %p165_p8 = scmp.lt.s32.totalorder %s1857_s18, 3 }
   0xc   : > { %p166_p9 = pnand %p1571_p7, %p165_p8 }
   0xd   : > { %p191_p10 = scmp.lt.s32.totalorder (!%p166_p9), %s1949_s19, 1  ;;  %v200_v0 = vld [vmem:[%s2753_s3] sm:$0xff] (!%p166_p9)  ;;  %v1859_v1 = vmov (!%p166_p9), 0.0   ;;  %v1860_v2 = vmov (!%p166_p9), 10   ;;  %v1861_v3 = vmov (!%p166_p9), 4   ;;  %v1862_v7 = vmov (!%p166_p9), 0  }
   0xe   : > { %169 = sbr.rel (%p166_p9) target bundleno = 1179 (0x49b), region = 36  ;;  %314 = vmatprep.mubr.f32.mxu0 (!%p166_p9), %v1859_v1  ;;  %1738 = vset.pattern.permute.xlu0 (!%p166_p9), %v1860_v2  ;;  %v1863_v12 = vmov (!%p166_p9), 1   ;;  %v1864_v18 = vmov (!%p166_p9), 3   ;;  %v1865_v19 = vmov (!%p166_p9), 2   ;;  %v196_v20 = vld [vmem:[%s2751_s1] sm:$0xff] (!%p166_p9)  ;;  %vm237_vm0 = vcmask (!%p166_p9), 261120  }
   0xf   : > { %219 = vperm.xlu0 (!%p166_p9), %1738, %v200_v0   ;;  %1740 = vset.pattern.permute.xlu1 (!%p166_p9), %v1861_v3  ;;  %v1866_v21 = vmov (!%p166_p9), 5   ;;  %v197_v22 = vld [vmem:[%s2751_s1 + $0x8] sm:$0xff] (!%p166_p9)  ;;  %v1867_v23 = vmov (!%p166_p9), 9   ;;  %v1868_v24 = vmov (!%p166_p9), 6   ;;  %v1869_v25 = vmov (!%p166_p9), 7   ;;  %v198_v27 = vld [vmem:[%s2751_s1 + $0x10] sm:$0xff] (!%p166_p9) }
  0x10   : > { %380 = vperm.xlu1 (!%p166_p9), %1740, %v200_v0   ;;  %906 = vmatprep.mubr.f32.mxu1 (!%p166_p9), %v1859_v1  ;;  %v1870_v26 = vmov (!%p166_p9), 8   ;;  %s1871_s14 = smov (!%p166_p9), 16   ;;  %s1872_s20 = smov (!%p166_p9), 17   ;;  %v201_v33 = vld [vmem:[%s2753_s3 + $0x8] sm:$0xff] (!%p166_p9)  ;;  %v204_v51 = vlaneseq (!%p166_p9) }
  0x11   : > { %s1873_s27 = smov (!%p166_p9), 15   ;;  %s1874_s28 = smov (!%p166_p9), 1  }
  0x12   : > { %s1877_s5 = smov (!%p166_p9), 111   ;;  %s1878_s6 = smov (!%p166_p9), 113   ;;  %v2076_v54 = vand.u32 (!%p166_p9), 127, %v204_v51 }
  0x13   : > { %1739 = vset.pattern.permute.xlu0 (!%p166_p9), %v1862_v7  ;;  %s1879_s10 = smov (!%p166_p9), 34   ;;  %s1880_s13 = smov (!%p166_p9), 32  }
  0x14   : > { %393 = vperm.xlu0 (!%p166_p9), %1739, %v200_v0   ;;  %1741 = vset.pattern.permute.xlu1 (!%p166_p9), %v1863_v12  ;;  %v2079_v56 = vadd.s32 (!%p166_p9), 128, %v2076_v54  ;;  %v2082_v57 = vand.u32 (!%p166_p9), 15, %v2076_v54  ;;  %vm389_vm1 = vcmp.lt.s32.totalorder (!%p166_p9), %v2076_v54, 17  ;;  %vm408_vm2 = vcmp.lt.s32.totalorder (!%p166_p9), %v2076_v54, 16  ;;  %s1882_s22 = smov (!%p166_p9), 30   ;;  %s1883_s23 = smov (!%p166_p9), 94  }
  0x15   : > { %s192_s29 = scalar_select %p191_p10, %s1949_s19, 1  ;;  %412 = vperm.xlu1 %1741, %v200_v0   ;;  %vm371_vm3 = vcmp.ge.s32.totalorder %v2076_v54, 16  ;;  %vm425_vm5 = vcmp.lt.s32.totalorder %v2076_v54, 15  ;;  %vm444_vm7 = vcmp.lt.s32.totalorder %v2076_v54, 1  ;;  %vm461_vm10 = vcmp.lt.s32.totalorder %v2076_v54, 127 }
  0x16   : > { %v2087_v61 = vand.u32 15, %v2079_v56  ;;  %vm375_vm4 = vcmp.ge.s32.totalorder %v2082_v57, 1  ;;  %vm377_vm9 = vcmp.lt.s32.totalorder %v2082_v57, 15  ;;  %vm478_vm13 = vcmp.lt.s32.totalorder %v2076_v54, 113  ;;  %s1889_s11 = smov 80   ;;  %s1890_s12 = smov 45  }
  0x17   : > { %s1612_s30 = sshll.u32 %s192_s29, 6  ;;  %s1875_s29 = smov 112   ;;  %vm2098_vm6 = vmand %vm371_vm3, %vm375_vm4  ;;  %vm374_vm14 = vcmp.lt.s32.totalorder %v2079_v56, 240  ;;  %vm497_vm15 = vcmp.lt.s32.totalorder %v2076_v54, 112 }
  0x18   : > { %s1988_s7 = scalar_lea.vmem %s2750_s0, %s1612_s30  ;;  %1743 = vset.pattern.permute.xlu0 %v1864_v18  ;;  %s1876_s30 = smov 127   ;;  %vm376_vm8 = vcmp.ge.s32.totalorder %v2087_v61, 1  ;;  %vm378_vm11 = vcmp.lt.s32.totalorder %v2087_v61, 15  ;;  %vm2121_vm12 = vmand %vm371_vm3, %vm377_vm9 }
  0x19   : > { %v210_v4 = vld [vmem:[%s1988_s7 + $0x8] sm:$0xff]  ;;  %v212_v5 = vld [vmem:[%s1988_s7 + $0x18] sm:$0xff]  ;;  %v209_v6 = vld [vmem:[%s1988_s7] sm:$0xff]  ;;  %448 = vperm.xlu0 %1743, %v200_v0   ;;  %1742 = vset.pattern.permute.xlu1 %v1865_v19  ;;  %s1897_s8 = smov 60  }
  0x1a   : > { %v1614_v8 = vpack.c.bf16 %v212_v5, %v210_v4  ;;  %v211_v9 = vld [vmem:[%s1988_s7 + $0x10] sm:$0xff]  ;;  %v214_v10 = vld [vmem:[%s1988_s7 + $0x28] sm:$0xff]  ;;  %v216_v11 = vld [vmem:[%s1988_s7 + $0x38] sm:$0xff]  ;;  %429 = vperm.xlu1 %1742, %v200_v0  }
  0x1b   : > { %v1616_v13 = vpack.c.bf16 %v211_v9, %v209_v6  ;;  %v1618_v14 = vpack.c.bf16 %v216_v11, %v214_v10  ;;  %v213_v15 = vld [vmem:[%s1988_s7 + $0x20] sm:$0xff]  ;;  %v215_v16 = vld [vmem:[%s1988_s7 + $0x30] sm:$0xff] }
  0x1c   : > { %1615 = vmatprep.subr.bf16.mxu0 %v1614_v8  ;;  %v1620_v17 = vpack.c.bf16 %v215_v16, %v213_v15 }
  0x1d   : > { %1617 = vmatpush1.bf16.msra.mxu0 %v1616_v13  ;;  %1744 = vset.pattern.permute.xlu0 %v1866_v21 }
  0x1e   : > { %1619 = vmatprep.subr.bf16.mxu0 %v1618_v14  ;;  %465 = vperm.xlu0 %1744, %v200_v0  }
  0x1f   : > { %1749 = vset.pattern.permute.xlu1 %v1867_v23 }
  0x20   : > { %530 = vperm.xlu1 %1749, %v200_v0  }
  0x21   : > { %1621 = vmatpush1.bf16.msra.mxu0 %v1620_v17 }
  0x22   : > { %1745 = vset.pattern.permute.xlu0 %v1868_v24 }
  0x23   : > { %482 = vperm.xlu0 %1745, %v200_v0  }
  0x24   : > { %1575 = vmatmul.mubr.msk.f32.vlgmr.msra.gmra.mrb[0].mxu0 %vm237_vm0, %v196_v20  ;;  %1750 = vset.pattern.permute.xlu1 %v1862_v7 }
  0x25   : > { %320 = vmatprep.mubr.f32.mxu0 %v1859_v1 }
  0x27   : > { %1746 = vset.pattern.permute.xlu0 %v1869_v25 }
  0x28   : > { %1576 = vmatmul.mubr.msk.f32.gmra.mrb[2].mxu0 %vm237_vm0, %v197_v22  ;;  %501 = vperm.xlu0 %1746, %v200_v0  }
  0x29   : > { %326 = vmatprep.mubr.f32.mxu0 %v1859_v1 }
  0x2c   : > { %1747 = vset.pattern.permute.xlu0 %v1870_v26  ;;  %1577 = vmatmul.mubr.msk.f32.gmra.mrb[4].mxu0 %vm237_vm0, %v198_v27 }
  0x2d   : > { %518 = vperm.xlu0 %1747, %v200_v0   ;;  %332 = vmatprep.mubr.f32.mxu0 %v1859_v1 }
  0x31   : > { %1748 = vset.pattern.permute.xlu0 %v1860_v2 }
  0x8e   : > { %v220_v28 = vpop.permute.xlu0 %219 }
  0x8f   : > { %v381_v38 = vpop.permute.xlu1 %380 }
  0x93   : > { %v394_v41 = vpop.permute.xlu0 %393 }
  0x94   : > { %v413_v39 = vpop.permute.xlu1 %412 }
  0x98   : > { %v449_v43 = vpop.permute.xlu0 %448 }
  0x99   : > { %v430_v40 = vpop.permute.xlu1 %429 }
  0x9d   : > { %v2066_v45 = vpop.permute.xlu0 %465 }
  0x9f   : > { %v2064_v42 = vpop.permute.xlu1 %530 }
  0xa2   : > { %v2068_v47 = vpop.permute.xlu0 %482 }
  0xa7   : > { %v2070_v50 = vpop.permute.xlu0 %501 }
  0xac   : > { %v2074_v53 = vpop.permute.xlu0 %518 }
  0xf7   : > { %v316_v29 = vpop.f32.mrb[0].mxu0 }
  0xf8   : > { %v317_v30 = vadd.f32 %v316_v29, %v220_v28  ;;  %v318_v31 = vpop.f32.mrb[1].mxu0 }
  0xf9   : > { %v319_v34 = vadd.f32 %v318_v31, %v220_v28 }
  0xfa   : > { %v2024_v32 = vmax.f32 %v317_v30, 0.0 }
  0xfb   : > { %v2036_v35 = vmax.f32 %v319_v34, 0.0  ;;  %v2046_v36 = vpop.f32.mrb[2].mxu0 }
  0xfc   : > { %404 = vrot.lane.b32.xlu1 %v2024_v32, %s1871_s14  ;;  %385 = vrot.lane.b32.xlu0 %v2024_v32, %s1872_s20  ;;  %v2048_v37 = vpop.f32.mrb[3].mxu0  ;;  %v383_v11 = vmul.f32 %v381_v38, %v2024_v32 }
  0xfd   : > { %v384_v22 = vmul.f32 %v381_v38, %v2036_v35 }
 0x100   : > { %421 = vrot.lane.b32.xlu1 %v2024_v32, %s1873_s27  ;;  %224 = vperm.xlu0 %1748, %v201_v33  }
 0x104   : > { %440 = vrot.lane.b32.xlu1 %v2024_v32, %s1874_s28  ;;  %493 = vrot.lane.b32.xlu0 %v2024_v32, %s1875_s29 }
 0x105   : > { %1751 = vset.pattern.permute.xlu0 %v1861_v3 }
 0x108   : > { %457 = vrot.lane.b32.xlu1 %v2024_v32, %s1876_s30  ;;  %512 = vrot.lane.b32.xlu0 %v2036_v35, %s1877_s5 }
 0x10c   : > { %474 = vrot.lane.b32.xlu1 %v2024_v32, %s1878_s6  ;;  %662 = vperm.xlu0 %1751, %v201_v33  }
 0x110   : > { %387 = vrot.lane.b32.xlu1 %v2036_v35, %s1872_s20  ;;  %1754 = vset.pattern.permute.xlu0 %v1864_v18  ;;  %s1881_s20 = smov 96  }
 0x111   : > { %730 = vperm.xlu0 %1754, %v201_v33  }
 0x114   : > { %406 = vrot.lane.b32.xlu1 %v2036_v35, %s1871_s14 }
 0x115   : > { %1755 = vset.pattern.permute.xlu0 %v1866_v21 }
 0x116   : > { %747 = vperm.xlu0 %1755, %v201_v33  }
 0x118   : > { %423 = vrot.lane.b32.xlu1 %v2036_v35, %s1873_s27  ;;  %s1884_s27 = smov 2  }
 0x11a   : > { %1756 = vset.pattern.permute.xlu0 %v1868_v24 }
 0x11b   : > { %764 = vperm.xlu0 %1756, %v201_v33  }
 0x11c   : > { %442 = vrot.lane.b32.xlu1 %v2036_v35, %s1874_s28  ;;  %s1885_s28 = smov 126  }
 0x11f   : > { %1757 = vset.pattern.permute.xlu0 %v1869_v25 }
 0x120   : > { %459 = vrot.lane.b32.xlu1 %v2036_v35, %s1876_s30  ;;  %783 = vperm.xlu0 %1757, %v201_v33   ;;  %s1896_s30 = smov 64  }
 0x124   : > { %476 = vrot.lane.b32.xlu1 %v2036_v35, %s1878_s6  ;;  %1758 = vset.pattern.permute.xlu0 %v1870_v26  ;;  %s1887_s6 = smov 51  }
 0x125   : > { %800 = vperm.xlu0 %1758, %v201_v33  }
 0x128   : > { %495 = vrot.lane.b32.xlu1 %v2036_v35, %s1875_s29  ;;  %s1886_s29 = smov 98  }
 0x129   : > { %1759 = vset.pattern.permute.xlu0 %v1860_v2 }
 0x12c   : > { %510 = vrot.lane.b32.xlu1 %v2024_v32, %s1877_s5 }
 0x130   : > { %675 = vperm.xlu1 %1750, %v201_v33  }
 0x134   : > { %1752 = vset.pattern.permute.xlu1 %v1863_v12 }
 0x135   : > { %694 = vperm.xlu1 %1752, %v201_v33  }
 0x139   : > { %1753 = vset.pattern.permute.xlu1 %v1865_v19 }
 0x13a   : > { %711 = vperm.xlu1 %1753, %v201_v33  }
 0x13e   : > { %1760 = vset.pattern.permute.xlu1 %v1867_v23 }
 0x13f   : > { %812 = vperm.xlu1 %1760, %v201_v33  }
 0x143   : > { %1761 = vset.pattern.permute.xlu1 %v1862_v7 }
 0x16e   : > { %v405_v44 = vpop.permute.xlu1 %404  ;;  %v386_v59 = vpop.permute.xlu0 %385 }
 0x172   : > { %v422_v46 = vpop.permute.xlu1 %421 }
 0x176   : > { %v441_v48 = vpop.permute.xlu1 %440 }
 0x17a   : > { %v458_v49 = vpop.permute.xlu1 %457 }
 0x17e   : > { %v2072_v52 = vpop.permute.xlu1 %474 }
 0x17f   : > { %v2127_v29 = vpop.permute.xlu0 %224 }
 0x182   : > { %v388_v55 = vpop.permute.xlu1 %387 }
 0x183   : > { %v391_v60 = vsel %vm389_vm1, %v388_v55, %v386_v59  ;;  %v390_v62 = vsel %vm389_vm1, %v386_v59, %v388_v55  ;;  %vm2154_vm1 = vmand %vm374_vm14, %vm376_vm8 }
 0x184   : > { %v396_v0 = vmul.f32 %v394_v41, %v391_v60  ;;  %v397_v6 = vmul.f32 %v394_v41, %v390_v62 }
 0x186   : > { %v407_v58 = vpop.permute.xlu1 %406  ;;  %v400_v13 = vsel %vm2098_vm6, %v396_v0, 0.0  ;;  %v401_v16 = vsel %vm376_vm8, %v397_v6, 0.0  ;;  %vm653_vm6 = vcmp.ge.s32.totalorder %v2076_v54, 32 }
 0x187   : > { %v410_v4 = vsel %vm408_vm2, %v407_v58, %v405_v44  ;;  %v409_v17 = vsel %vm408_vm2, %v405_v44, %v407_v58  ;;  %v402_v30 = vadd.f32 %v400_v13, %v383_v11  ;;  %v403_v35 = vadd.f32 %v401_v16, %v384_v22 }
 0x188   : > { %v415_v9 = vmul.f32 %v413_v39, %v410_v4  ;;  %v416_v38 = vmul.f32 %v413_v39, %v409_v17  ;;  %vm514_vm2 = vcmp.lt.s32.totalorder %v2076_v54, 111 }
 0x18a   : > { %v424_v63 = vpop.permute.xlu1 %423  ;;  %v417_v31 = vsel %vm371_vm3, %v415_v9, 0.0  ;;  %v420_v59 = vadd.f32 %v416_v38, %v403_v35  ;;  %vm524_vm3 = vmand %vm374_vm14, %vm378_vm11  ;;  %v199_v35 = vld [vmem:[%s2751_s1 + $0x18] sm:$0xff] }
 0x18b   : > { %v427_v8 = vsel %vm425_vm5, %v424_v63, %v422_v46  ;;  %v426_v14 = vsel %vm425_vm5, %v422_v46, %v424_v63  ;;  %v494_v63 = vpop.permute.xlu0 %493  ;;  %1578 = vmatmul.mubr.msk.f32.gmra.mrb[6].mxu0 %vm237_vm0, %v199_v35  ;;  %vm541_vm0 = vcmask 64512   ;;  %vm690_vm5 = vcmp.lt.s32.totalorder %v2076_v54, 32 }
 0x18c   : > { %v432_v20 = vmul.f32 %v430_v40, %v427_v8  ;;  %v433_v32 = vmul.f32 %v430_v40, %v426_v14  ;;  %618 = vmatprep.mubr.f32.mxu0 %v1859_v1 }
 0x18e   : > { %v443_v10 = vpop.permute.xlu1 %442  ;;  %v436_v46 = vsel %vm2121_vm12, %v432_v20, 0.0  ;;  %v437_v40 = vsel %vm378_vm11, %v433_v32, 0.0  ;;  %vm743_vm12 = vcmp.lt.s32.totalorder %v2076_v54, 126 }
 0x18f   : > { %v446_v15 = vsel %vm444_vm7, %v443_v10, %v441_v48  ;;  %v445_v28 = vsel %vm444_vm7, %v441_v48, %v443_v10  ;;  %v419_v48 = vadd.f32 %v417_v31, %v402_v30  ;;  %v439_v6 = vadd.f32 %v437_v40, %v420_v59 }
 0x190   : > { %v451_v33 = vmul.f32 %v449_v43, %v446_v15  ;;  %v452_v51 = vmul.f32 %v449_v43, %v445_v28  ;;  %v513_v28 = vpop.permute.xlu0 %512  ;;  %vm657_vm7 = vcmp.ge.s32.totalorder %v2082_v57, 2 }
 0x191   : > { %v438_v43 = vadd.f32 %v436_v46, %v419_v48  ;;  %v325_v48 = vadd.f32 %v2048_v37, %v2127_v29  ;;  %v2216_v37 = vpop.f32.mrb[4].mxu0 }
 0x192   : > { %v460_v34 = vpop.permute.xlu1 %459  ;;  %v453_v58 = vsel %vm375_vm4, %v451_v33, 0.0  ;;  %v454_v0 = vsel %vm376_vm8, %v452_v51, 0.0  ;;  %vm707_vm8 = vcmp.lt.s32.totalorder %v2076_v54, 30 }
 0x193   : > { %v462_v41 = vsel %vm461_vm10, %v458_v49, %v460_v34  ;;  %v463_v44 = vsel %vm461_vm10, %v460_v34, %v458_v49  ;;  %v455_v8 = vadd.f32 %v453_v58, %v438_v43  ;;  %v456_v13 = vadd.f32 %v454_v0, %v439_v6  ;;  %vm2270_vm10 = vmand %vm653_vm6, %vm657_vm7 }
 0x194   : > { %v468_v55 = vmul.f32 %v2066_v45, %v462_v41  ;;  %v469_v39 = vmul.f32 %v2066_v45, %v463_v44  ;;  %v342_v59 = vmax.f32 %v325_v48, 0.0 }
 0x196   : > { %v477_v49 = vpop.permute.xlu1 %476  ;;  %v470_v4 = vsel %vm377_vm9, %v468_v55, 0.0  ;;  %v323_v55 = vadd.f32 %v2046_v36, %v2127_v29  ;;  %v2201_v36 = vld [vmem:[%s2753_s3 + $0x10] sm:$0xff]  ;;  %v537_v29 = vld [vmem:[%s2752_s2] sm:$0xff] }
 0x197   : > { %v479_v60 = vsel %vm478_vm13, %v2072_v52, %v477_v49  ;;  %v480_v62 = vsel %vm478_vm13, %v477_v49, %v2072_v52  ;;  %v471_v52 = vsel %vm378_vm11, %v469_v39, 0.0  ;;  %v472_v14 = vadd.f32 %v470_v4, %v455_v8 }
 0x198   : > { %v485_v5 = vmul.f32 %v2068_v47, %v479_v60  ;;  %v486_v45 = vmul.f32 %v2068_v47, %v480_v62  ;;  %v473_v20 = vadd.f32 %v471_v52, %v456_v13  ;;  %v341_v49 = vmax.f32 %v323_v55, 0.0 }
 0x199   : > { %vm659_vm11 = vcmp.lt.s32.totalorder %v2082_v57, 14  ;;  %vm658_vm13 = vcmp.ge.s32.totalorder %v2087_v61, 2 }
 0x19a   : > { %v489_v10 = vsel %vm375_vm4, %v485_v5, 0.0  ;;  %v496_v11 = vpop.permute.xlu1 %495  ;;  %v490_v16 = vsel %vm2154_vm1, %v486_v45, 0.0  ;;  %v663_v5 = vpop.permute.xlu0 %662  ;;  %vm671_vm4 = vcmp.lt.s32.totalorder %v2076_v54, 34  ;;  %vm760_vm1 = vcmp.lt.s32.totalorder %v2076_v54, 98 }
 0x19b   : > { %v498_v47 = vsel %vm497_vm15, %v494_v63, %v496_v11  ;;  %v499_v15 = vsel %vm497_vm15, %v496_v11, %v494_v63  ;;  %v491_v22 = vadd.f32 %v489_v10, %v472_v14  ;;  %v492_v32 = vadd.f32 %v490_v16, %v473_v20  ;;  %vm2289_vm15 = vmand %vm653_vm6, %vm659_vm11 }
 0x19c   : > { %v505_v17 = vmul.f32 %v2070_v50, %v499_v15  ;;  %v504_v27 = vmul.f32 %v2070_v50, %v498_v47 }
 0x19e   : > { %v507_v30 = vsel %vm374_vm14, %v505_v17, 0.0  ;;  %v511_v31 = vpop.permute.xlu1 %510  ;;  %v508_v41 = vadd.f32 %v504_v27, %v491_v22  ;;  %v731_v45 = vpop.permute.xlu0 %730  ;;  %vm660_vm14 = vcmp.lt.s32.totalorder %v2087_v61, 14 }
 0x19f   : > { %v515_v33 = vsel %vm514_vm2, %v511_v31, %v513_v28  ;;  %v516_v34 = vsel %vm514_vm2, %v513_v28, %v511_v31  ;;  %v509_v44 = vadd.f32 %v507_v30, %v492_v32  ;;  %vm656_vm2 = vcmp.lt.s32.totalorder %v2079_v56, 224 }
 0x1a0   : > { %v521_v38 = vmul.f32 %v2074_v53, %v515_v33  ;;  %v522_v50 = vmul.f32 %v2074_v53, %v516_v34 }
 0x1a2   : > { %v525_v46 = vsel %vm377_vm9, %v521_v38, 0.0  ;;  %v526_v51 = vsel %vm524_vm3, %v522_v50, 0.0  ;;  %v748_v8 = vpop.permute.xlu0 %747  ;;  %vm726_vm9 = vcmp.lt.s32.totalorder %v2076_v54, 2  ;;  %vm779_vm3 = vcmp.lt.s32.totalorder %v2076_v54, 96 }
 0x1a3   : > { %v527_v40 = vadd.f32 %v525_v46, %v508_v41  ;;  %v528_v58 = vadd.f32 %v526_v51, %v509_v44 }
 0x1a5   : > { %v533_v53 = vadd.f32 %v2064_v42, %v527_v40  ;;  %v534_v39 = vadd.f32 %v2064_v42, %v528_v58  ;;  %v2219_v42 = vpop.f32.mrb[5].mxu0 }
 0x1a6   : > { %v2252_v10 = vpop.permute.xlu0 %764 }
 0x1a7   : > { %v535_v43 = vmax.f32 %v533_v53, 0.0  ;;  %v536_v60 = vmax.f32 %v534_v39, 0.0 }
 0x1a9   : > { %v2192_v62 = vadd.f32 %v535_v43, %v341_v49  ;;  %554 = vmatprep.subr.mxu0 %v536_v60  ;;  %v2194_v63 = vadd.f32 %v536_v60, %v342_v59 }
 0x1aa   : > { %555 = vmatpush1.msra.mxu0 %v535_v43  ;;  %v2254_v13 = vpop.permute.xlu0 %783 }
 0x1ab   : > { %669 = vrot.lane.b32.xlu1 %v2194_v63, %s1879_s10  ;;  %667 = vrot.lane.b32.xlu0 %v2192_v62, %s1879_s10  ;;  %v665_v51 = vmul.f32 %v663_v5, %v2192_v62  ;;  %v666_v60 = vmul.f32 %v663_v5, %v2194_v63  ;;  %s1888_s10 = smov 48  }
 0x1ac   : > { %1579 = vmatmul.mubr.msk.f32.vlgmr.msra.gmra.mrb[8].mxu0 %vm541_vm0, %v537_v29 }
 0x1ad   : > { %624 = vmatprep.mubr.f32.mxu0 %v1859_v1 }
 0x1ae   : > { %v2256_v15 = vpop.permute.xlu0 %800 }
 0x1af   : > { %686 = vrot.lane.b32.xlu1 %v2192_v62, %s1880_s13  ;;  %229 = vperm.xlu0 %1759, %v2201_v36  }
 0x1b3   : > { %688 = vrot.lane.b32.xlu1 %v2194_v63, %s1880_s13  ;;  %775 = vrot.lane.b32.xlu0 %v2192_v62, %s1881_s20  ;;  %s1891_s13 = smov 77  }
 0x1b4   : > { %1762 = vset.pattern.permute.xlu0 %v1861_v3 }
 0x1b7   : > { %703 = vrot.lane.b32.xlu1 %v2192_v62, %s1882_s22  ;;  %794 = vrot.lane.b32.xlu0 %v2194_v63, %s1883_s23 }
 0x1bb   : > { %705 = vrot.lane.b32.xlu1 %v2194_v63, %s1882_s22  ;;  %944 = vperm.xlu0 %1762, %v2201_v36   ;;  %s1893_s22 = smov 125  }
 0x1bf   : > { %722 = vrot.lane.b32.xlu1 %v2192_v62, %s1884_s27  ;;  %1765 = vset.pattern.permute.xlu0 %v1864_v18 }
 0x1c0   : > { %1012 = vperm.xlu0 %1765, %v2201_v36  }
 0x1c3   : > { %724 = vrot.lane.b32.xlu1 %v2194_v63, %s1884_s27 }
 0x1c4   : > { %1766 = vset.pattern.permute.xlu0 %v1866_v21 }
 0x1c5   : > { %1029 = vperm.xlu0 %1766, %v2201_v36  }
 0x1c7   : > { %739 = vrot.lane.b32.xlu1 %v2192_v62, %s1885_s28 }
 0x1c9   : > { %1767 = vset.pattern.permute.xlu0 %v1868_v24 }
 0x1ca   : > { %1046 = vperm.xlu0 %1767, %v2201_v36  }
 0x1cb   : > { %741 = vrot.lane.b32.xlu1 %v2194_v63, %s1885_s28  ;;  %s1899_s28 = smov 124  }
 0x1ce   : > { %1768 = vset.pattern.permute.xlu0 %v1869_v25 }
 0x1cf   : > { %756 = vrot.lane.b32.xlu1 %v2192_v62, %s1886_s29  ;;  %1065 = vperm.xlu0 %1768, %v2201_v36  }
 0x1d3   : > { %758 = vrot.lane.b32.xlu1 %v2194_v63, %s1886_s29  ;;  %1769 = vset.pattern.permute.xlu0 %v1870_v26  ;;  %s1895_s29 = smov 68  }
 0x1d4   : > { %1082 = vperm.xlu0 %1769, %v2201_v36  }
 0x1d7   : > { %777 = vrot.lane.b32.xlu1 %v2194_v63, %s1881_s20  ;;  %s1892_s20 = smov 3  }
 0x1d8   : > { %1770 = vset.pattern.permute.xlu0 %v1860_v2  ;;  %v676_v2 = vpop.permute.xlu1 %675 }
 0x1db   : > { %792 = vrot.lane.b32.xlu1 %v2192_v62, %s1883_s23  ;;  %s1894_s23 = smov 83  }
 0x1dc   : > { %v695_v0 = vpop.permute.xlu1 %694 }
 0x1df   : > { %957 = vperm.xlu1 %1761, %v2201_v36  }
 0x1e0   : > { %v712_v4 = vpop.permute.xlu1 %711 }
 0x1e3   : > { %1763 = vset.pattern.permute.xlu1 %v1863_v12 }
 0x1e4   : > { %976 = vperm.xlu1 %1763, %v2201_v36   ;;  %v2250_v6 = vpop.permute.xlu1 %812 }
 0x1e8   : > { %1764 = vset.pattern.permute.xlu1 %v1865_v19 }
 0x1e9   : > { %993 = vperm.xlu1 %1764, %v2201_v36  }
 0x1ed   : > { %1771 = vset.pattern.permute.xlu1 %v1867_v23 }
 0x1ee   : > { %1094 = vperm.xlu1 %1771, %v2201_v36  }
 0x1f2   : > { %1772 = vset.pattern.permute.xlu1 %v1862_v7 }
 0x21d   : > { %v670_v9 = vpop.permute.xlu1 %669  ;;  %v668_v16 = vpop.permute.xlu0 %667 }
 0x21e   : > { %v673_v20 = vsel %vm671_vm4, %v670_v9, %v668_v16  ;;  %v672_v27 = vsel %vm671_vm4, %v668_v16, %v670_v9  ;;  %vm2323_vm4 = vmand %vm656_vm2, %vm658_vm13 }
 0x21f   : > { %v678_v30 = vmul.f32 %v676_v2, %v673_v20  ;;  %v679_v33 = vmul.f32 %v676_v2, %v672_v27 }
 0x221   : > { %v687_v52 = vpop.permute.xlu1 %686  ;;  %v682_v41 = vsel %vm2270_vm10, %v678_v30, 0.0  ;;  %v683_v58 = vsel %vm658_vm13, %v679_v33, 0.0  ;;  %vm939_vm10 = vcmp.ge.s32.totalorder %v2082_v57, 3 }
 0x222   : > { %v684_v62 = vadd.f32 %v682_v41, %v665_v51 }
 0x225   : > { %v689_v11 = vpop.permute.xlu1 %688 }
 0x226   : > { %v692_v28 = vsel %vm690_vm5, %v689_v11, %v687_v52  ;;  %v691_v44 = vsel %vm690_vm5, %v687_v52, %v689_v11  ;;  %vm796_vm5 = vcmp.lt.s32.totalorder %v2076_v54, 94 }
 0x227   : > { %v697_v34 = vmul.f32 %v695_v0, %v692_v28  ;;  %v698_v29 = vmul.f32 %v695_v0, %v691_v44 }
 0x229   : > { %v704_v14 = vpop.permute.xlu1 %703  ;;  %v699_v53 = vsel %vm653_vm6, %v697_v34, 0.0  ;;  %vm806_vm6 = vmand %vm656_vm2, %vm660_vm14 }
 0x22d   : > { %v706_v47 = vpop.permute.xlu1 %705 }
 0x22e   : > { %v709_v32 = vsel %vm707_vm8, %v706_v47, %v704_v14  ;;  %v708_v38 = vsel %vm707_vm8, %v704_v14, %v706_v47  ;;  %v230_v49 = vpop.permute.xlu0 %229  ;;  %v685_v14 = vadd.f32 %v683_v58, %v666_v60  ;;  %v701_v47 = vadd.f32 %v699_v53, %v684_v62 }
 0x22f   : > { %v714_v46 = vmul.f32 %v712_v4, %v709_v32  ;;  %v715_v39 = vmul.f32 %v712_v4, %v708_v38  ;;  %vm972_vm8 = vcmp.lt.s32.totalorder %v2076_v54, 48 }
 0x231   : > { %v723_v7 = vpop.permute.xlu1 %722  ;;  %v718_v9 = vsel %vm2289_vm15, %v714_v46, 0.0  ;;  %v719_v4 = vsel %vm660_vm14, %v715_v39, 0.0  ;;  %vm1025_vm15 = vcmp.lt.s32.totalorder %v2076_v54, 125 }
 0x232   : > { %v720_v16 = vadd.f32 %v718_v9, %v701_v47  ;;  %v776_v20 = vpop.permute.xlu0 %775 }
 0x235   : > { %v725_v17 = vpop.permute.xlu1 %724 }
 0x236   : > { %v728_v50 = vsel %vm726_vm9, %v725_v17, %v723_v7  ;;  %v727_v48 = vsel %vm726_vm9, %v723_v7, %v725_v17  ;;  %v702_v7 = vadd.f32 %v698_v29, %v685_v14  ;;  %vm935_vm9 = vcmp.ge.s32.totalorder %v2076_v54, 48 }
 0x237   : > { %v733_v59 = vmul.f32 %v731_v45, %v728_v50  ;;  %v734_v52 = vmul.f32 %v731_v45, %v727_v48 }
 0x238   : > { %v721_v31 = vadd.f32 %v719_v4, %v702_v7 }
 0x239   : > { %v740_v22 = vpop.permute.xlu1 %739  ;;  %v735_v63 = vsel %vm657_vm7, %v733_v59, 0.0 }
 0x23d   : > { %v742_v35 = vpop.permute.xlu1 %741 }
 0x23e   : > { %v744_v40 = vsel %vm743_vm12, %v740_v22, %v742_v35  ;;  %v745_v2 = vsel %vm743_vm12, %v742_v35, %v740_v22  ;;  %v736_v22 = vsel %vm658_vm13, %v734_v52, 0.0  ;;  %v329_v52 = vadd.f32 %v2216_v37, %v230_v49  ;;  %v2363_v37 = vld [vmem:[%s2753_s3 + $0x18] sm:$0xff]  ;;  %vm2426_vm13 = vmand %vm935_vm9, %vm939_vm10 }
 0x23f   : > { %v750_v11 = vmul.f32 %v748_v8, %v744_v40  ;;  %v751_v0 = vmul.f32 %v748_v8, %v745_v2  ;;  %v737_v8 = vadd.f32 %v735_v63, %v720_v16  ;;  %v738_v38 = vadd.f32 %v736_v22, %v721_v31  ;;  %v795_v40 = vpop.permute.xlu0 %794 }
 0x240   : > { %vm1008_vm12 = vcmp.lt.s32.totalorder %v2076_v54, 3 }
 0x241   : > { %v757_v43 = vpop.permute.xlu1 %756  ;;  %v752_v27 = vsel %vm659_vm11, %v750_v11, 0.0  ;;  %v753_v33 = vsel %vm660_vm14, %v751_v0, 0.0  ;;  %v331_v11 = vadd.f32 %v2219_v42, %v230_v49  ;;  %v343_v0 = vmax.f32 %v329_v52, 0.0 }
 0x242   : > { %v754_v50 = vadd.f32 %v752_v27, %v737_v8  ;;  %v755_v51 = vadd.f32 %v753_v33, %v738_v38  ;;  %vm941_vm14 = vcmp.lt.s32.totalorder %v2082_v57, 13 }
 0x245   : > { %v759_v5 = vpop.permute.xlu1 %758 }
 0x246   : > { %v761_v45 = vsel %vm760_vm1, %v757_v43, %v759_v5  ;;  %v762_v17 = vsel %vm760_vm1, %v759_v5, %v757_v43  ;;  %v344_v5 = vmax.f32 %v331_v11, 0.0  ;;  %vm940_vm1 = vcmp.ge.s32.totalorder %v2087_v61, 3 }
 0x247   : > { %v767_v28 = vmul.f32 %v2252_v10, %v761_v45  ;;  %v768_v30 = vmul.f32 %v2252_v10, %v762_v17 }
 0x249   : > { %v771_v34 = vsel %vm657_vm7, %v767_v28, 0.0  ;;  %v778_v35 = vpop.permute.xlu1 %777  ;;  %v772_v44 = vsel %vm2323_vm4, %v768_v30, 0.0  ;;  %vm953_vm7 = vcmp.lt.s32.totalorder %v2076_v54, 51  ;;  %vm1042_vm4 = vcmp.lt.s32.totalorder %v2076_v54, 83 }
 0x24a   : > { %v780_v10 = vsel %vm779_vm3, %v776_v20, %v778_v35  ;;  %v781_v41 = vsel %vm779_vm3, %v778_v35, %v776_v20  ;;  %v773_v55 = vadd.f32 %v771_v34, %v754_v50  ;;  %v774_v39 = vadd.f32 %v772_v44, %v755_v51  ;;  %vm2445_vm3 = vmand %vm935_vm9, %vm941_vm14 }
 0x24b   : > { %v787_v46 = vmul.f32 %v2254_v13, %v781_v41  ;;  %v786_v48 = vmul.f32 %v2254_v13, %v780_v10 }
 0x24d   : > { %v789_v58 = vsel %vm656_vm2, %v787_v46, 0.0  ;;  %v793_v53 = vpop.permute.xlu1 %792  ;;  %v790_v29 = vadd.f32 %v786_v48, %v773_v55  ;;  %vm942_vm2 = vcmp.lt.s32.totalorder %v2087_v61, 13 }
 0x24e   : > { %v797_v59 = vsel %vm796_vm5, %v793_v53, %v795_v40  ;;  %v798_v43 = vsel %vm796_vm5, %v795_v40, %v793_v53  ;;  %v791_v2 = vadd.f32 %v789_v58, %v774_v39  ;;  %vm938_vm5 = vcmp.lt.s32.totalorder %v2079_v56, 208 }
 0x24f   : > { %v803_v60 = vmul.f32 %v2256_v15, %v797_v59  ;;  %v804_v62 = vmul.f32 %v2256_v15, %v798_v43 }
 0x251   : > { %v807_v13 = vsel %vm659_vm11, %v803_v60, 0.0  ;;  %v808_v9 = vsel %vm806_vm6, %v804_v62, 0.0  ;;  %vm989_vm11 = vcmp.lt.s32.totalorder %v2076_v54, 45  ;;  %vm1061_vm6 = vcmp.lt.s32.totalorder %v2076_v54, 80 }
 0x252   : > { %v809_v14 = vadd.f32 %v807_v13, %v790_v29  ;;  %v810_v47 = vadd.f32 %v808_v9, %v791_v2 }
 0x254   : > { %v815_v4 = vadd.f32 %v2250_v6, %v809_v14  ;;  %v816_v63 = vadd.f32 %v2250_v6, %v810_v47 }
 0x256   : > { %v817_v7 = vmax.f32 %v815_v4, 0.0  ;;  %v818_v15 = vmax.f32 %v816_v63, 0.0 }
 0x258   : > { %v2354_v16 = vadd.f32 %v817_v7, %v343_v0  ;;  %836 = vmatprep.subr.mxu0 %v818_v15  ;;  %v2356_v45 = vadd.f32 %v818_v15, %v344_v5  ;;  %1622 = vmatprep.subr.mxu1 %v818_v15 }
 0x259   : > { %837 = vmatpush1.msra.mxu0 %v817_v7  ;;  %1623 = vmatpush1.msra.mxu1 %v817_v7 }
 0x25a   : > { %951 = vrot.lane.b32.xlu1 %v2356_v45, %s1887_s6  ;;  %949 = vrot.lane.b32.xlu0 %v2354_v16, %s1887_s6 }
 0x25e   : > { %968 = vrot.lane.b32.xlu1 %v2354_v16, %s1888_s10  ;;  %234 = vperm.xlu0 %1770, %v2363_v37  }
 0x262   : > { %970 = vrot.lane.b32.xlu1 %v2356_v45, %s1888_s10  ;;  %1057 = vrot.lane.b32.xlu0 %v2354_v16, %s1889_s11 }
 0x263   : > { %1773 = vset.pattern.permute.xlu0 %v1861_v3  ;;  %v2378_v3 = vpop.f32.mrb[6].mxu0 }
 0x264   : > { %v2381_v42 = vpop.f32.mrb[7].mxu0 }
 0x266   : > { %985 = vrot.lane.b32.xlu1 %v2354_v16, %s1890_s12  ;;  %1076 = vrot.lane.b32.xlu0 %v2356_v45, %s1891_s13 }
 0x26a   : > { %987 = vrot.lane.b32.xlu1 %v2356_v45, %s1890_s12  ;;  %1226 = vperm.xlu0 %1773, %v2363_v37  }
 0x26e   : > { %1004 = vrot.lane.b32.xlu1 %v2354_v16, %s1892_s20  ;;  %1776 = vset.pattern.permute.xlu0 %v1864_v18  ;;  %v1584_v18 = vld [vmem:[%s2752_s2 + $0x28] sm:$0xff] }
 0x26f   : > { %1294 = vperm.xlu0 %1776, %v2363_v37   ;;  %1588 = vmatmul.mubr.msk.f32.vlgmr.msra.gmra.mrb[0].mxu1 %vm541_vm0, %v1584_v18 }
 0x270   : > { %912 = vmatprep.mubr.f32.mxu1 %v1859_v1 }
 0x272   : > { %1006 = vrot.lane.b32.xlu1 %v2356_v45, %s1892_s20  ;;  %s1613_s20 = sshll.u32 %s1949_s19, 10 }
 0x273   : > { %1779 = vset.pattern.permute.xlu0 %v1869_v25  ;;  %v958_v25 = vpop.permute.xlu1 %957  ;;  %s2700_s27 = scalar_lea.hbm %s2754_s4, %s1613_s20 }
 0x274   : > { %1333 = vperm.xlu0 %1779, %v2363_v37  }
 0x276   : > { %1021 = vrot.lane.b32.xlu1 %v2354_v16, %s1893_s22 }
 0x278   : > { %1780 = vset.pattern.permute.xlu0 %v1870_v26  ;;  %v977_v26 = vpop.permute.xlu1 %976 }
 0x27a   : > { %1023 = vrot.lane.b32.xlu1 %v2356_v45, %s1893_s22  ;;  %s1898_s22 = smov 4  }
 0x27c   : > { %v994_v6 = vpop.permute.xlu1 %993 }
 0x27e   : > { %1038 = vrot.lane.b32.xlu1 %v2354_v16, %s1894_s23 }
 0x280   : > { %v2406_v17 = vpop.permute.xlu1 %1094 }
 0x282   : > { %1040 = vrot.lane.b32.xlu1 %v2356_v45, %s1894_s23 }
 0x286   : > { %1059 = vrot.lane.b32.xlu1 %v2356_v45, %s1889_s11  ;;  %s188_s11 = sand.u32 1, %s1849_s16  }
 0x287   : > { %s1572_s12 = sshll.u32 %s188_s11, 6  ;;  %s2708_s19 = scalar_lea.sflag [#allocation3], %s188_s11 }
 0x28a   : > { %1074 = vrot.lane.b32.xlu1 %v2354_v16, %s1891_s13  ;;  %s2685_s13 = scalar_lea.vmem [#allocation2], %s1572_s12 }
 0x28e   : > { %1239 = vperm.xlu1 %1772, %v2363_v37  }
 0x292   : > { %1774 = vset.pattern.permute.xlu1 %v1863_v12  ;;  %v945_v12 = vpop.permute.xlu0 %944 }
 0x293   : > { %1258 = vperm.xlu1 %1774, %v2363_v37   ;;  %v947_v59 = vmul.f32 %v945_v12, %v2354_v16  ;;  %v948_v14 = vmul.f32 %v945_v12, %v2356_v45 }
 0x296   : > { %v1013_v49 = vpop.permute.xlu0 %1012 }
 0x297   : > { %1775 = vset.pattern.permute.xlu1 %v1865_v19 }
 0x298   : > { %1275 = vperm.xlu1 %1775, %v2363_v37  }
 0x29a   : > { %v1030_v19 = vpop.permute.xlu0 %1029 }
 0x29c   : > { %1777 = vset.pattern.permute.xlu1 %v1866_v21 }
 0x29d   : > { %1311 = vperm.xlu1 %1777, %v2363_v37  }
 0x29e   : > { %v2408_v27 = vpop.permute.xlu0 %1046 }
 0x2a1   : > { %1778 = vset.pattern.permute.xlu1 %v1868_v24 }
 0x2a2   : > { %1321 = vperm.xlu1 %1778, %v2363_v37   ;;  %v2410_v28 = vpop.permute.xlu0 %1065 }
 0x2a6   : > { %1781 = vset.pattern.permute.xlu1 %v1867_v23  ;;  %v2412_v31 = vpop.permute.xlu0 %1082 }
 0x2cc   : > { %v952_v20 = vpop.permute.xlu1 %951  ;;  %v950_v32 = vpop.permute.xlu0 %949 }
 0x2cd   : > { %v955_v34 = vsel %vm953_vm7, %v952_v20, %v950_v32  ;;  %v954_v38 = vsel %vm953_vm7, %v950_v32, %v952_v20  ;;  %vm2479_vm7 = vmand %vm938_vm5, %vm940_vm1 }
 0x2ce   : > { %v960_v10 = vmul.f32 %v958_v25, %v955_v34  ;;  %v961_v46 = vmul.f32 %v958_v25, %v954_v38 }
 0x2d0   : > { %v969_v22 = vpop.permute.xlu1 %968  ;;  %v964_v58 = vsel %vm2426_vm13, %v960_v10, 0.0  ;;  %v965_v29 = vsel %vm940_vm1, %v961_v46, 0.0  ;;  %vm1221_vm13 = vcmp.ge.s32.totalorder %v2082_v57, 4 }
 0x2d1   : > { %v966_v47 = vadd.f32 %v964_v58, %v947_v59  ;;  %v967_v15 = vadd.f32 %v965_v29, %v948_v14 }
 0x2d4   : > { %v971_v21 = vpop.permute.xlu1 %970 }
 0x2d5   : > { %v974_v50 = vsel %vm972_vm8, %v971_v21, %v969_v22  ;;  %v973_v53 = vsel %vm972_vm8, %v969_v22, %v971_v21  ;;  %vm1078_vm8 = vcmp.lt.s32.totalorder %v2076_v54, 77 }
 0x2d6   : > { %v979_v51 = vmul.f32 %v977_v26, %v974_v50  ;;  %v980_v4 = vmul.f32 %v977_v26, %v973_v53 }
 0x2d8   : > { %v986_v24 = vpop.permute.xlu1 %985  ;;  %v981_v2 = vsel %vm935_vm9, %v979_v51, 0.0  ;;  %vm1088_vm9 = vmand %vm938_vm5, %vm942_vm2 }
 0x2d9   : > { %v983_v16 = vadd.f32 %v981_v2, %v966_v47 }
 0x2dc   : > { %v988_v30 = vpop.permute.xlu1 %987 }
 0x2dd   : > { %v991_v44 = vsel %vm989_vm11, %v988_v30, %v986_v24  ;;  %v990_v48 = vsel %vm989_vm11, %v986_v24, %v988_v30  ;;  %v235_v9 = vpop.permute.xlu0 %234  ;;  %vm1254_vm11 = vcmp.lt.s32.totalorder %v2076_v54, 64 }
 0x2de   : > { %v996_v39 = vmul.f32 %v994_v6, %v991_v44  ;;  %v997_v13 = vmul.f32 %v994_v6, %v990_v48  ;;  %v984_v6 = vadd.f32 %v980_v4, %v967_v15 }
 0x2e0   : > { %v1005_v8 = vpop.permute.xlu1 %1004  ;;  %v1000_v0 = vsel %vm2445_vm3, %v996_v39, 0.0  ;;  %v1001_v18 = vsel %vm942_vm2, %v997_v13, 0.0  ;;  %vm1223_vm3 = vcmp.lt.s32.totalorder %v2082_v57, 12  ;;  %v1601_v57 = vld [vmem:[%s2752_s2 + $0x70] sm:$0xff] }
 0x2e1   : > { %v1002_v12 = vadd.f32 %v1000_v0, %v983_v16  ;;  %v1058_v22 = vpop.permute.xlu0 %1057  ;;  %v1003_v32 = vadd.f32 %v1001_v18, %v984_v6  ;;  %v539_v18 = vld [vmem:[%s2752_s2 + $0x10] sm:$0xff]  ;;  %v1583_v6 = vld [vmem:[%s2752_s2 + $0x20] sm:$0xff] }
 0x2e4   : > { %v1007_v33 = vpop.permute.xlu1 %1006 }
 0x2e5   : > { %v1010_v40 = vsel %vm1008_vm12, %v1007_v33, %v1005_v8  ;;  %v1009_v60 = vsel %vm1008_vm12, %v1005_v8, %v1007_v33  ;;  %vm1217_vm12 = vcmp.ge.s32.totalorder %v2076_v54, 64 }
 0x2e6   : > { %v1015_v52 = vmul.f32 %v1013_v49, %v1010_v40  ;;  %v1016_v5 = vmul.f32 %v1013_v49, %v1009_v60  ;;  %v1077_v40 = vpop.permute.xlu0 %1076 }
 0x2e8   : > { %v1022_v35 = vpop.permute.xlu1 %1021  ;;  %v1017_v45 = vsel %vm939_vm10, %v1015_v52, 0.0  ;;  %v1018_v21 = vsel %vm940_vm1, %v1016_v5, 0.0  ;;  %v335_v52 = vadd.f32 %v2378_v3, %v235_v9  ;;  %v1585_v3 = vld [vmem:[%s2752_s2 + $0x30] sm:$0xff]  ;;  %vm1290_vm1 = vcmp.lt.s32.totalorder %v2076_v54, 4 }
 0x2e9   : > { %v1020_v50 = vadd.f32 %v1018_v21, %v1003_v32  ;;  %1589 = vmatmul.mubr.msk.f32.gmra.mrb[2].mxu1 %vm541_vm0, %v1585_v3 }
 0x2ea   : > { %v345_v0 = vmax.f32 %v335_v52, 0.0  ;;  %918 = vmatprep.mubr.f32.mxu1 %v1859_v1 }
 0x2ec   : > { %v1024_v55 = vpop.permute.xlu1 %1023 }
 0x2ed   : > { %v1026_v62 = vsel %vm1025_vm15, %v1022_v35, %v1024_v55  ;;  %v1027_v63 = vsel %vm1025_vm15, %v1024_v55, %v1022_v35  ;;  %vm1222_vm15 = vcmp.ge.s32.totalorder %v2087_v61, 4 }
 0x2ee   : > { %v1032_v7 = vmul.f32 %v1030_v19, %v1026_v62  ;;  %v1033_v25 = vmul.f32 %v1030_v19, %v1027_v63  ;;  %v1019_v19 = vadd.f32 %v1017_v45, %v1002_v12  ;;  %v1592_v45 = vld [vmem:[%s2752_s2 + $0x48] sm:$0xff]  ;;  %v1594_v12 = vld [vmem:[%s2752_s2 + $0x58] sm:$0xff] }
 0x2f0   : > { %v1039_v11 = vpop.permute.xlu1 %1038  ;;  %v1034_v24 = vsel %vm941_vm14, %v1032_v7, 0.0  ;;  %v1035_v34 = vsel %vm942_vm2, %v1033_v25, 0.0  ;;  %v540_v25 = vld [vmem:[%s2752_s2 + $0x18] sm:$0xff]  ;;  %vm2601_vm2 = vmand %vm1217_vm12, %vm1221_vm13 }
 0x2f1   : > { %v1036_v10 = vadd.f32 %v1034_v24, %v1019_v19  ;;  %v1037_v51 = vadd.f32 %v1035_v34, %v1020_v50 }
 0x2f4   : > { %v1041_v26 = vpop.permute.xlu1 %1040 }
 0x2f5   : > { %v1043_v49 = vsel %vm1042_vm4, %v1039_v11, %v1041_v26  ;;  %v1044_v20 = vsel %vm1042_vm4, %v1041_v26, %v1039_v11  ;;  %v337_v11 = vadd.f32 %v2381_v42, %v235_v9  ;;  %v1586_v42 = vld [vmem:[%s2752_s2 + $0x38] sm:$0xff]  ;;  %v1591_v9 = vld [vmem:[%s2752_s2 + $0x40] sm:$0xff]  ;;  %v1593_v26 = vld [vmem:[%s2752_s2 + $0x50] sm:$0xff]  ;;  %vm1224_vm4 = vcmp.lt.s32.totalorder %v2087_v61, 12 }
 0x2f6   : > { %v1049_v30 = vmul.f32 %v2408_v27, %v1043_v49  ;;  %v1050_v8 = vmul.f32 %v2408_v27, %v1044_v20  ;;  %1590 = vmatmul.mubr.msk.f32.gmra.mrb[4].mxu1 %vm541_vm0, %v1586_v42  ;;  %v1900_v49 = vmov 11   ;;  %v1785_v20 = vld [vmem:[%s2753_s3] sm:$0xff] }
 0x2f7   : > { %v346_v5 = vmax.f32 %v337_v11, 0.0  ;;  %1182 = vmatprep.mubr.f32.mxu1 %v1859_v1 }
 0x2f8   : > { %v1053_v35 = vsel %vm939_vm10, %v1049_v30, 0.0  ;;  %v1060_v38 = vpop.permute.xlu1 %1059  ;;  %v1054_v44 = vsel %vm2479_vm7, %v1050_v8, 0.0  ;;  %v1227_v8 = vpop.permute.xlu0 %1226  ;;  %vm1235_vm10 = vcmp.lt.s32.totalorder %v2076_v54, 68  ;;  %vm1220_vm7 = vcmp.lt.s32.totalorder %v2079_v56, 192  ;;  %v1600_v56 = vld [vmem:[%s2752_s2 + $0x68] sm:$0xff] }
 0x2f9   : > { %v1062_v27 = vsel %vm1061_vm6, %v1058_v22, %v1060_v38  ;;  %v1063_v41 = vsel %vm1061_vm6, %v1060_v38, %v1058_v22  ;;  %v1055_v55 = vadd.f32 %v1053_v35, %v1036_v10  ;;  %v1056_v39 = vadd.f32 %v1054_v44, %v1037_v51  ;;  %v1786_v22 = vld [vmem:[%s2753_s3 + $0x8] sm:$0xff] }
 0x2fa   : > { %v1069_v46 = vmul.f32 %v2410_v28, %v1063_v41  ;;  %v1068_v48 = vmul.f32 %v2410_v28, %v1062_v27  ;;  %vm1307_vm6 = vcmp.lt.s32.totalorder %v2076_v54, 124 }
 0x2fc   : > { %v1071_v58 = vsel %vm938_vm5, %v1069_v46, 0.0  ;;  %v1075_v53 = vpop.permute.xlu1 %1074  ;;  %v1072_v29 = vadd.f32 %v1068_v48, %v1055_v55  ;;  %v1295_v19 = vpop.permute.xlu0 %1294  ;;  %vm2619_vm5 = vmand %vm1217_vm12, %vm1223_vm3 }
 0x2fd   : > { %v1079_v59 = vsel %vm1078_vm8, %v1075_v53, %v1077_v40  ;;  %v1080_v43 = vsel %vm1078_vm8, %v1077_v40, %v1075_v53  ;;  %v1073_v2 = vadd.f32 %v1071_v58, %v1056_v39  ;;  %vm1327_vm8 = vmand %vm1220_vm7, %vm1222_vm15 }
 0x2fe   : > { %v1085_v60 = vmul.f32 %v2412_v31, %v1079_v59  ;;  %v1086_v62 = vmul.f32 %v2412_v31, %v1080_v43 }
 0x300   : > { %v1089_v28 = vsel %vm941_vm14, %v1085_v60, 0.0  ;;  %v1090_v13 = vsel %vm1088_vm9, %v1086_v62, 0.0  ;;  %v2586_v34 = vpop.permute.xlu0 %1333  ;;  %vm1271_vm14 = vcmp.lt.s32.totalorder %v2076_v54, 60  ;;  %vm1349_vm9 = vmand %vm1220_vm7, %vm1224_vm4 }
 0x301   : > { %v1091_v14 = vadd.f32 %v1089_v28, %v1072_v29  ;;  %v1092_v47 = vadd.f32 %v1090_v13, %v1073_v2 }
 0x303   : > { %v1097_v4 = vadd.f32 %v2406_v17, %v1091_v14  ;;  %v1098_v63 = vadd.f32 %v2406_v17, %v1092_v47  ;;  %v538_v17 = vld [vmem:[%s2752_s2 + $0x8] sm:$0xff] }
 0x304   : > { %1580 = vmatmul.mubr.msk.f32.gmra.mrb[10].mxu0 %vm541_vm0, %v538_v17 }
 0x305   : > { %v1099_v7 = vmax.f32 %v1097_v4, 0.0  ;;  %v1100_v31 = vmax.f32 %v1098_v63, 0.0  ;;  %630 = vmatprep.mubr.f32.mxu0 %v1859_v1 }
 0x307   : > { %v2510_v15 = vadd.f32 %v1099_v7, %v345_v0  ;;  %1118 = vmatprep.subr.mxu1 %v1100_v31  ;;  %v2512_v16 = vadd.f32 %v1100_v31, %v346_v5 }
 0x308   : > { %1119 = vmatpush1.msra.mxu1 %v1099_v7  ;;  %1581 = vmatmul.mubr.msk.f32.gmra.mrb[12].mxu0 %vm541_vm0, %v539_v18 }
 0x309   : > { %1233 = vrot.lane.b32.xlu1 %v2512_v16, %s1895_s29  ;;  %1231 = vrot.lane.b32.xlu0 %v2510_v15, %s1895_s29  ;;  %v1230_v43 = vmul.f32 %v1227_v8, %v2512_v16  ;;  %v1229_v13 = vmul.f32 %v1227_v8, %v2510_v15  ;;  %s1901_s29 = smov [#allocation2]  }
 0x30a   : > { %1595 = vmatmul.mubr.msk.f32.vlgmr.msra.gmra.mrb[6].mxu1 %vm541_vm0, %v1591_v9  ;;  %636 = vmatprep.mubr.f32.mxu0 %v1859_v1 }
 0x30b   : > { %1188 = vmatprep.mubr.f32.mxu1 %v1859_v1 }
 0x30c   : > { %1582 = vmatmul.mubr.msk.f32.gmra.mrb[14].mxu0 %vm541_vm0, %v540_v25 }
 0x30d   : > { %1250 = vrot.lane.b32.xlu1 %v2510_v15, %s1896_s30  ;;  %1252 = vrot.lane.b32.xlu0 %v2512_v16, %s1896_s30  ;;  %v1240_v21 = vpop.permute.xlu1 %1239  ;;  %s1799_s30 = sshll.u32 %s1901_s29, 4  ;;  %s1800_s30 = int_to_ptr.vmem [resolvable:$false] %s1799_s30 }
 0x30e   : > { %1596 = vmatmul.mubr.msk.f32.gmra.mrb[0].mxu1 %vm541_vm0, %v1592_v45  ;;  %900 = vmatprep.mubr.f32.mxu0 %v1859_v1  ;;  %s1801_s5 = scalar_lea.vmem %s1800_s30, 2048 }
 0x30f   : > { %1194 = vmatprep.mubr.f32.mxu1 %v1859_v1 }
 0x310   : > { %1587 = vmatmul.mubr.msk.f32.vlgmr.msra.gmra.mrb[8].mxu0 %vm541_vm0, %v1583_v6 }
 0x311   : > { %1267 = vrot.lane.b32.xlu1 %v2510_v15, %s1897_s8  ;;  %1269 = vrot.lane.b32.xlu0 %v2512_v16, %s1897_s8 }
 0x312   : > { %1597 = vmatmul.mubr.msk.f32.gmra.mrb[2].mxu1 %vm541_vm0, %v1593_v26  ;;  %v1259_v24 = vpop.permute.xlu1 %1258 }
 0x313   : > { %1200 = vmatprep.mubr.f32.mxu1 %v1859_v1 }
 0x315   : > { %1288 = vrot.lane.b32.xlu1 %v2512_v16, %s1898_s22  ;;  %1286 = vrot.lane.b32.xlu0 %v2510_v15, %s1898_s22 }
 0x316   : > { %1598 = vmatmul.mubr.msk.f32.gmra.mrb[4].mxu1 %vm541_vm0, %v1594_v12 }
 0x317   : > { %1443 = vmatprep.mubr.f32.mxu1 %v1859_v1  ;;  %v1276_v30 = vpop.permute.xlu1 %1275 }
 0x319   : > { %1303 = vrot.lane.b32.xlu1 %v2510_v15, %s1899_s28  ;;  %1343 = vperm.xlu0 %1780, %v2363_v37  }
 0x31c   : > { %v1312_v32 = vpop.permute.xlu1 %1311 }
 0x31d   : > { %1305 = vrot.lane.b32.xlu1 %v2512_v16, %s1899_s28  ;;  %1783 = vset.pattern.permute.xlu0 %v1900_v49 }
 0x31e   : > { %352 = vperm.xlu0 %1783, %v1786_v22  }
 0x321   : > { %1355 = vperm.xlu1 %1781, %v2363_v37   ;;  %v2584_v33 = vpop.permute.xlu1 %1321 }
 0x322   : > { %1784 = vset.pattern.permute.xlu0 %v1867_v23 }
 0x325   : > { %1782 = vset.pattern.permute.xlu1 %v1900_v49 }
 0x326   : > { %348 = vperm.xlu1 %1782, %v1785_v20  }
 0x32a   : > { %356 = vperm.xlu1 %1782, %v2201_v36  }
 0x32e   : > { %360 = vperm.xlu1 %1782, %v2363_v37  }
 0x37b   : > { %v1234_v35 = vpop.permute.xlu1 %1233  ;;  %v1232_v38 = vpop.permute.xlu0 %1231 }
 0x37c   : > { %v1236_v10 = vsel %vm1235_vm10, %v1232_v38, %v1234_v35  ;;  %v1237_v23 = vsel %vm1235_vm10, %v1234_v35, %v1232_v38 }
 0x37d   : > { %v1243_v41 = vmul.f32 %v1240_v21, %v1236_v10  ;;  %v1242_v46 = vmul.f32 %v1240_v21, %v1237_v23  ;;  %v1324_v22 = vmul.f32 %v2584_v33, %v1236_v10  ;;  %v1325_v21 = vmul.f32 %v2584_v33, %v1237_v23 }
 0x37f   : > { %v1251_v50 = vpop.permute.xlu1 %1250  ;;  %v1253_v36 = vpop.permute.xlu0 %1252  ;;  %v1247_v53 = vsel %vm1222_vm15, %v1243_v41, 0.0  ;;  %v1246_v29 = vsel %vm2601_vm2, %v1242_v46, 0.0  ;;  %v1328_v8 = vsel %vm1221_vm13, %v1324_v22, 0.0 }
 0x380   : > { %v1256_v44 = vsel %vm1254_vm11, %v1253_v36, %v1251_v50  ;;  %v1255_v39 = vsel %vm1254_vm11, %v1251_v50, %v1253_v36  ;;  %v1249_v52 = vadd.f32 %v1247_v53, %v1230_v43  ;;  %v1248_v5 = vadd.f32 %v1246_v29, %v1229_v13  ;;  %v1602_v53 = vld [vmem:[%s2752_s2 + $0x78] sm:$0xff] }
 0x381   : > { %v1261_v59 = vmul.f32 %v1259_v24, %v1256_v44  ;;  %v1262_v11 = vmul.f32 %v1259_v24, %v1255_v39  ;;  %v1336_v10 = vmul.f32 %v2586_v34, %v1255_v39 }
 0x383   : > { %v1268_v37 = vpop.permute.xlu1 %1267  ;;  %v1270_v27 = vpop.permute.xlu0 %1269  ;;  %v1263_v4 = vsel %vm1217_vm12, %v1261_v59, 0.0  ;;  %v1266_v16 = vadd.f32 %v1262_v11, %v1249_v52  ;;  %v1788_v11 = vld [vmem:[%s1988_s7 + $0x8] sm:$0xff] }
 0x384   : > { %v1272_v55 = vsel %vm1271_vm14, %v1268_v37, %v1270_v27  ;;  %v1273_v48 = vsel %vm1271_vm14, %v1270_v27, %v1268_v37  ;;  %v1265_v15 = vadd.f32 %v1263_v4, %v1248_v5 }
 0x385   : > { %v1278_v2 = vmul.f32 %v1276_v30, %v1273_v48  ;;  %v1279_v28 = vmul.f32 %v1276_v30, %v1272_v55 }
 0x387   : > { %v1289_v40 = vpop.permute.xlu1 %1288  ;;  %v1287_v58 = vpop.permute.xlu0 %1286  ;;  %v1282_v7 = vsel %vm2619_vm5, %v1278_v2, 0.0  ;;  %v1283_v31 = vsel %vm1224_vm4, %v1279_v28, 0.0 }
 0x388   : > { %v1291_v60 = vsel %vm1290_vm1, %v1287_v58, %v1289_v40  ;;  %v1292_v62 = vsel %vm1290_vm1, %v1289_v40, %v1287_v58  ;;  %v1284_v45 = vadd.f32 %v1282_v7, %v1265_v15  ;;  %v1285_v25 = vadd.f32 %v1283_v31, %v1266_v16  ;;  %v1790_v31 = vld [vmem:[%s1988_s7 + $0x18] sm:$0xff] }
 0x389   : > { %v1297_v63 = vmul.f32 %v1295_v19, %v1292_v62  ;;  %v1298_v0 = vmul.f32 %v1295_v19, %v1291_v60  ;;  %v1337_v19 = vmul.f32 %v2586_v34, %v1256_v44  ;;  %v1599_v34 = vld [vmem:[%s2752_s2 + $0x60] sm:$0xff] }
 0x38b   : > { %v1304_v47 = vpop.permute.xlu1 %1303  ;;  %v1299_v42 = vsel %vm1221_vm13, %v1297_v63, 0.0  ;;  %v1300_v17 = vsel %vm1222_vm15, %v1298_v0, 0.0  ;;  %v1339_v23 = vsel %vm1220_vm7, %v1337_v19, 0.0  ;;  %v1789_v0 = vld [vmem:[%s1988_s7 + $0x10] sm:$0xff] }
 0x38c   : > { %v1301_v6 = vadd.f32 %v1299_v42, %v1284_v45  ;;  %v1302_v12 = vadd.f32 %v1300_v17, %v1285_v25 }
 0x38f   : > { %v1306_v3 = vpop.permute.xlu1 %1305 }
 0x390   : > { %v1308_v9 = vsel %vm1307_vm6, %v1304_v47, %v1306_v3  ;;  %v1309_v18 = vsel %vm1307_vm6, %v1306_v3, %v1304_v47 }
 0x391   : > { %v1314_v54 = vmul.f32 %v1312_v32, %v1308_v9  ;;  %v1315_v26 = vmul.f32 %v1312_v32, %v1309_v18  ;;  %v1329_v32 = vsel %vm1327_vm8, %v1325_v21, 0.0  ;;  %v1791_v18 = vld [vmem:[%s1988_s7 + $0x20] sm:$0xff] }
 0x393   : > { %v1316_v49 = vsel %vm1223_vm3, %v1314_v54, 0.0  ;;  %v1317_v20 = vsel %vm1224_vm4, %v1315_v26, 0.0  ;;  %v1792_v26 = vld [vmem:[%s1988_s7 + $0x28] sm:$0xff] }
 0x394   : > { %v1318_v24 = vadd.f32 %v1316_v49, %v1301_v6  ;;  %v1319_v30 = vadd.f32 %v1317_v20, %v1302_v12 }
 0x396   : > { %v1330_v50 = vadd.f32 %v1328_v8, %v1318_v24  ;;  %v1331_v36 = vadd.f32 %v1329_v32, %v1319_v30  ;;  %v1793_v8 = vld [vmem:[%s1988_s7 + $0x30] sm:$0xff] }
 0x398   : > { %v1344_v35 = vpop.permute.xlu0 %1343  ;;  %v1340_v41 = vadd.f32 %v1336_v10, %v1330_v50  ;;  %v1341_v44 = vadd.f32 %v1339_v23, %v1331_v36 }
 0x399   : > { %v1346_v33 = vmul.f32 %v1344_v35, %v1272_v55  ;;  %v1347_v38 = vmul.f32 %v1344_v35, %v1273_v48 }
 0x39b   : > { %v1350_v37 = vsel %vm1223_vm3, %v1346_v33, 0.0  ;;  %v1351_v27 = vsel %vm1349_vm9, %v1347_v38, 0.0  ;;  %v1794_v33 = vld [vmem:[%s1988_s7 + $0x38] sm:$0xff] }
 0x39c   : > { %v1352_v46 = vadd.f32 %v1350_v37, %v1340_v41  ;;  %v1353_v61 = vadd.f32 %v1351_v27, %v1341_v44 }
 0x39d   : > { %v353_v47 = vpop.permute.xlu0 %352 }
 0x39e   : > { %v365_v5 = vadd.f32 %v1789_v0, %v353_v47  ;;  %v366_v15 = vadd.f32 %v1790_v31, %v353_v47 }
 0x3a0   : > { %v1356_v51 = vpop.permute.xlu1 %1355 }
 0x3a1   : > { %v1358_v40 = vadd.f32 %v1356_v51, %v1352_v46  ;;  %v1359_v58 = vadd.f32 %v1356_v51, %v1353_v61 }
 0x3a3   : > { %v1360_v55 = vmax.f32 %v1358_v40, 0.0  ;;  %v1361_v48 = vmax.f32 %v1359_v58, 0.0 }
 0x3a5   : > { %1379 = vmatprep.subr.mxu1 %v1361_v48  ;;  %v349_v13 = vpop.permute.xlu1 %348 }
 0x3a6   : > { %1380 = vmatpush1.msra.mxu1 %v1360_v55  ;;  %v364_v14 = vadd.f32 %v1788_v11, %v349_v13 }
 0x3a7   : > { %1603 = vmatmul.mubr.msk.f32.vlgmr.msra.gmra.mrb[6].mxu1 %vm541_vm0, %v1599_v34 }
 0x3a8   : > { %1449 = vmatprep.mubr.f32.mxu1 %v1859_v1 }
 0x3a9   : > { %v357_v4 = vpop.permute.xlu1 %356 }
 0x3aa   : > { %v367_v45 = vadd.f32 %v1791_v18, %v357_v4  ;;  %v368_v6 = vadd.f32 %v1792_v26, %v357_v4 }
 0x3ab   : > { %1604 = vmatmul.mubr.msk.f32.gmra.mrb[0].mxu1 %vm541_vm0, %v1600_v56 }
 0x3ac   : > { %1455 = vmatprep.mubr.f32.mxu1 %v1859_v1 }
 0x3ad   : > { %v361_v20 = vpop.permute.xlu1 %360 }
 0x3ae   : > { %v369_v32 = vadd.f32 %v1793_v8, %v361_v20  ;;  %v370_v38 = vadd.f32 %v1794_v33, %v361_v20 }
 0x3af   : > { %1605 = vmatmul.mubr.msk.f32.gmra.mrb[2].mxu1 %vm541_vm0, %v1601_v57 }
 0x3b0   : > { %1461 = vmatprep.mubr.f32.mxu1 %v1859_v1  ;;  %v1787_v1 = vld [vmem:[%s1988_s7] sm:$0xff]  ;;  %s1506_s7 = sshll.u32 %s2685_s13, 4  ;;  %s2702_s7 = int_to_ptr.vmem [resolvable:$true] %s1506_s7 }
 0x3b1   : > { %v363_v52 = vadd.f32 %v1787_v1, %v349_v13  ;;  %s1795_s28 = scalar_lea.vmem %s2702_s7, 1024  ;;  %p1802_p0 = scmp.lt.s32.totalorder %s2702_s7, %s1800_s30 }
 0x3b2   : > { %p1796_p11 = scmp.ne.s32.totalorder %s2702_s7, %s1795_s28  ;;  %p1803_p1 = scmp.lt.s32.totalorder %s1801_s5, %s1795_s28 }
 0x3b3   : > { %1606 = vmatmul.mubr.msk.f32.gmra.mrb[4].mxu1 %vm541_vm0, %v1602_v53 }
 0x3b4   : > { %p1797_p12 = pnand %p1796_p11, %p1966_p5  ;;  %p1804_p2 = por %p1803_p1, %p1802_p0 }
 0x3b6   : > { %p1798_p13 = pneg %p1797_p12 }
 0x3b8   : > { %p1805_p3 = pnand %p1804_p2, %p1798_p13 }
 0x3d7   : > { %v626_v39 = vpop.f32.mrb[10].mxu0 }
 0x3d8   : > { %v628_v59 = vpop.f32.mrb[11].mxu0  ;;  %v645_v25 = vadd.f32 %v626_v39, %v365_v5 }
 0x3d9   : > { %v646_v49 = vadd.f32 %v628_v59, %v366_v15 }
 0x3db   : > { %v632_v43 = vpop.f32.mrb[12].mxu0 }
 0x3dc   : > { %v634_v60 = vpop.f32.mrb[13].mxu0  ;;  %v647_v19 = vadd.f32 %v632_v43, %v367_v45 }
 0x3dd   : > { %v648_v36 = vadd.f32 %v634_v60, %v368_v6 }
 0x3df   : > { %v638_v62 = vpop.f32.mrb[14].mxu0 }
 0x3e0   : > { %v640_v29 = vpop.f32.mrb[15].mxu0  ;;  %v649_v41 = vadd.f32 %v638_v62, %v369_v32 }
 0x3e1   : > { %v650_v61 = vadd.f32 %v640_v29, %v370_v38 }
 0x3e3   : > { %v902_v2 = vpop.f32.mrb[8].mxu0 }
 0x3e4   : > { %v904_v28 = vpop.f32.mrb[9].mxu0  ;;  %v1624_v63 = vadd.f32 %v902_v2, %v363_v52 }
 0x3e5   : > { %v1626_v7 = vadd.f32 %v904_v28, %v364_v14 }
 0x47a   : > { %v1445_v16 = vpop.f32.mrb[6].mxu1 }
 0x47b   : > { %v1625_v3 = vadd.f32 %v1624_v63, %v1445_v16  ;;  %v1447_v42 = vpop.f32.mrb[7].mxu1 }
 0x47c   : > { %v1627_v17 = vadd.f32 %v1626_v7, %v1447_v42 }
 0x47d   : > { %v1476_v9 = vmax.f32 %v1625_v3, 0.0 }
 0x47e   : > { %v1477_v54 = vmax.f32 %v1627_v17, 0.0  ;;  %v1451_v12 = vpop.f32.mrb[0].mxu1 }
 0x47f   : > { %1484 = vst [vmem:[%s2685_s13] sm:$0xff] %v1476_v9  ;;  %v1629_v22 = vadd.f32 %v1451_v12, %v645_v25  ;;  %v1453_v21 = vpop.f32.mrb[1].mxu1 }
 0x480   : > { %1485 = vst [vmem:[%s2685_s13 + $0x8] sm:$0xff] %v1477_v54  ;;  %v1631_v24 = vadd.f32 %v1453_v21, %v646_v49 }
 0x481   : > { %v1478_v30 = vmax.f32 %v1629_v22, 0.0 }
 0x482   : > { %v1479_v35 = vmax.f32 %v1631_v24, 0.0  ;;  %v1457_v50 = vpop.f32.mrb[2].mxu1 }
 0x483   : > { %1486 = vst [vmem:[%s2685_s13 + $0x10] sm:$0xff] %v1478_v30  ;;  %v1633_v10 = vadd.f32 %v1457_v50, %v647_v19  ;;  %v1459_v23 = vpop.f32.mrb[3].mxu1 }
 0x484   : > { %1487 = vst [vmem:[%s2685_s13 + $0x18] sm:$0xff] %v1479_v35  ;;  %v1635_v37 = vadd.f32 %v1459_v23, %v648_v36 }
 0x485   : > { %v1480_v27 = vmax.f32 %v1633_v10, 0.0 }
 0x486   : > { %v1481_v44 = vmax.f32 %v1635_v37, 0.0  ;;  %v1463_v46 = vpop.f32.mrb[4].mxu1 }
 0x487   : > { %1488 = vst [vmem:[%s2685_s13 + $0x20] sm:$0xff] %v1480_v27  ;;  %v1637_v51 = vadd.f32 %v1463_v46, %v649_v41  ;;  %v1465_v40 = vpop.f32.mrb[5].mxu1 }
 0x488   : > { %1489 = vst [vmem:[%s2685_s13 + $0x28] sm:$0xff] %v1481_v44  ;;  %v1639_v58 = vadd.f32 %v1465_v40, %v650_v61 }
 0x489   : > { %v1482_v55 = vmax.f32 %v1637_v51, 0.0 }
 0x48a   : > { %v1483_v48 = vmax.f32 %v1639_v58, 0.0 }
 0x48b   : > { %1490 = vst [vmem:[%s2685_s13 + $0x30] sm:$0xff] %v1482_v55 }
 0x48c   : > { %1491 = vst [vmem:[%s2685_s13 + $0x38] sm:$0xff] %v1483_v48 }
 0x48d   : > { %1808 = shalt.err (!%p1805_p3)
}
 0x48e   : > { %s1809_s6 = scalar_lea.hbm %s2700_s27, 1024  ;;  %s1813_s10 = scalar_lea.hbm %s2754_s4, 2048 }
 0x48f   : > { %p1810_p4 = scmp.ne.s32.totalorder %s2700_s27, %s1809_s6  ;;  %p1814_p9 = scmp.lt.u32.totalorder %s2700_s27, %s2754_s4 }
 0x490   : > { %p1815_p10 = scmp.lt.u32.totalorder %s1813_s10, %s1809_s6  ;;  %p1817_p12 = scmp.lt.u32.totalorder %s1809_s6, %s2700_s27 }
 0x491   : > { %p1811_p7 = pnand %p1810_p4, %p1966_p5 }
 0x492   : > { %p1816_p11 = por %p1815_p10, %p1814_p9 }
 0x493   : > { %p1812_p8 = pneg %p1811_p7 }
 0x494   : > { %p1818_p13 = por %p1817_p12, %p1816_p11 }
 0x496   : > { %p1819_p0 = pnand %p1818_p13, %p1812_p8 }
 0x498   : > { %1822 = shalt.err (!%p1819_p0)
}
 0x499   : > { %s1902_s13 = smov 256  }
 0x49a   : > { %1656 = dma.vmem_to_hbm [thread:$0]  (%p1966_p5), %s2702_s7, 1024, %s2700_s27, %s2708_s19, %s1902_s13, %s1902_s13, %s1871_s14  }
 0x49b PF: > { %p1662_p1 = scmp.ge.s32.totalorder %s1857_s18, 2  ;;  %s1521_s20 = sand.u32 1, %s1845_s15  }
 0x49c   : > { %s1522_s22 = scalar_lea.sflag [#allocation3], %s1521_s20 }
 0x49d   : > { %p1659_p2 = pnand %p1662_p1, %p1970_p6 }
 0x49f   : > { %1840 = dma.done.wait (!%p1659_p2), %s1522_s22, 1024  }
 0x4a0   : > { %1842 = vsyncadd (!%p1659_p2), %s1522_s22, 4294966272  ;;  %p14_p3 = scmp.ge.s32.totalorder %s1953_s21, 4   ;;  %s2779_s15 = smov %s1849_s16 }
 0x4a1   : > { %s2780_s16 = smov %s1853_s17  ;;  %s2781_s17 = smov %s1964_s24 }
 0x4a2   : > { %s2782_s18 = smov %s1953_s21  ;;  %16 = sbr.rel (!%p14_p3) target bundleno = 3 (0x3), region = 74 }
 0x4a9   :  { %1527 = vsyncpa [#allocation3], 1 }
 0x4aa   :  { %1529 = vsyncpa [#allocation3 + $0x1], 1 }

</bundles_post_ra>
